<compile_context>
chip_gen: v5e
topology: v5e:2x2
jax: 0.10.0
libtpu: 0.0.40
codegen_flags: <defaults>
</compile_context>

<pallas_src>
import math

import jax
import jax.numpy as jnp
from jax.experimental import pallas as pl
from jax.experimental.pallas import tpu as pltpu

# ---------------- problem sizes (small, consistent with module) ----------------
B = 2          # batch
N = 8          # set size (logits are N x N)
D_IN = 32      # input_size
H = 32         # hidden_size (defaults to input_size)
NUM_HEADS = 4
DH = H // NUM_HEADS
SCALE = 1.0 / math.sqrt(DH)

# ---------------- packed-slab layout (static offsets used inside the kernel) ----------------
N_MATS = 14        # 14 (H, H) matrices stacked along the sublane axis -> (448, 32)
N_BIAS_ROWS = 16   # 14 (1, H) bias/vector rows, zero-padded to 16     -> (16, 32)

# matrix slots (row offset = slot * H, always a multiple of 8 -> sublane aligned)
M_FC1, M_FC2 = 0, 1
M_SAB0 = 2                     # each SAB layer: wq, wk, wv, we, wo  (5 slots)
M_FCQ, M_FCK = 12, 13
# bias rows
B_FC1, B_FC2 = 0, 1
B_SAB0 = 2                     # each SAB layer: bq, bk, bv, bo      (4 rows)
B_FCQ, B_FCK = 10, 11
B_COMP_V, B_COMP_B = 12, 13


# ---------------- single fused kernel (one grid step = one batch element) ----------------
def affinity_add_kernel(x_ref, w_ref, b_ref, o_ref):
    f32 = jnp.float32

    def W(i):                      # i-th (H, H) weight: static, 32-row sublane-aligned slice
        return w_ref[i * H:(i + 1) * H, :]

    def bias(i):                   # i-th (1, H) bias row
        return b_ref[i:i + 1, :]

    # ---- fc: Linear -> Tanh -> Linear on this batch's (N, D_IN) slab ----
    x = x_ref[0]                                                           # (N, D_IN)
    h1 = jnp.tanh(jnp.dot(x, W(M_FC1), preferred_element_type=f32) + bias(B_FC1))
    cur = jnp.dot(h1, W(M_FC2), preferred_element_type=f32) + bias(B_FC2)  # (N, H)

    # ---- two SAB blocks: additive multi-head self-attention with residual ----
    for layer in range(2):          # static unroll over the two stacked SAB layers
        mi = M_SAB0 + 5 * layer
        bi = B_SAB0 + 4 * layer
        q = jnp.dot(cur, W(mi + 0), preferred_element_type=f32) + bias(bi + 0)
        k = jnp.dot(cur, W(mi + 1), preferred_element_type=f32) + bias(bi + 1)
        v = jnp.dot(cur, W(mi + 2), preferred_element_type=f32) + bias(bi + 2)

        # additive compatibility; W_e is block-masked so that t @ W_e yields every head's
        # score already broadcast over that head's DH channels (no head-expand matmul).
        t = jnp.tanh(q[:, None, :] + k[None, :, :])                       # (N, N, H)
        e = jnp.dot(t.reshape(N * N, H), W(mi + 3),
                    preferred_element_type=f32).reshape(N, N, H) * SCALE

        # scaled softmax over the key axis (axis=1), normalization deferred past the
        # key contraction (runs on (N, H) instead of the (N, N, H) path).
        m = jnp.max(e, axis=1, keepdims=True)
        p = jnp.exp(e - m)                                                 # (N, N, H)
        l = jnp.sum(p, axis=1)                                             # (N, H)
        num = jnp.sum(p * v[None, :, :], axis=1)                           # (N, H)
        o = num * pl.reciprocal(l, approx=True)

        cur = cur + jnp.dot(o, W(mi + 4), preferred_element_type=f32) + bias(bi + 3)

    # ---- fc_q / fc_k -> AddComp -> symmetrized logits ----
    q = jnp.dot(cur, W(M_FCQ), preferred_element_type=f32) + bias(B_FCQ)
    k = jnp.dot(cur, W(M_FCK), preferred_element_type=f32) + bias(B_FCK)
    t = jnp.tanh(q[:, None, :] + k[None, :, :] + bias(B_COMP_B))           # (N, N, H)
    e = jnp.sum(t * bias(B_COMP_V), axis=-1)                               # (N, N)
    o_ref[0] = 0.5 * (e + e.T)


# ---------------- one-time parameter packing (hoisted out of the forward) ----------------
def pack_params(p):
    head_of = jnp.arange(H) // DH

    def w_e(sp):
        # W_e[d, c] = wadd[head(d), d % DH] if head(d) == head(c) else 0.
        mask = (head_of[:, None] == head_of[None, :]).astype(jnp.float32)  # (H, H)
        return sp["wadd"].reshape(H)[:, None] * mask                       # (H, H)

    mats = [p["fc_w1"], p["fc_w2"]]
    for sp in (p["sab1"], p["sab2"]):
        mats += [sp["wq"], sp["wk"], sp["wv"], w_e(sp), sp["wo"]]
    mats += [p["fcq_w"], p["fck_w"]]
    w_slab = jnp.concatenate(mats, axis=0)                                 # (N_MATS*H, H)

    rows = [p["fc_b1"], p["fc_b2"]]
    for sp in (p["sab1"], p["sab2"]):
        rows += [sp["bq"], sp["bk"], sp["bv"], sp["bo"]]
    rows += [p["fcq_b"], p["fck_b"], p["comp_v"], p["comp_b"],
             jnp.zeros((N_BIAS_ROWS - 14, H), jnp.float32)]                # pad to 16 rows
    b_slab = jnp.concatenate(rows, axis=0)                                 # (N_BIAS_ROWS, H)
    return w_slab, b_slab


# ---------------- forward: takes the pre-packed slabs (no packing in the hot path) ----------
@jax.jit
def affinity_add_forward(x, w_slab, b_slab):
    return pl.pallas_call(
        affinity_add_kernel,
        out_shape=jax.ShapeDtypeStruct((B, N, N), jnp.float32),
        grid=(B,),
        in_specs=[
            pl.BlockSpec((1, N, D_IN), lambda b: (b, 0, 0)),        # per-batch activations
            pl.BlockSpec((N_MATS * H, H), lambda b: (0, 0)),        # weight slab, resident
            pl.BlockSpec((N_BIAS_ROWS, H), lambda b: (0, 0)),       # bias slab, resident
        ],
        out_specs=pl.BlockSpec((1, N, N), lambda b: (b, 0, 0)),
        compiler_params=pltpu.CompilerParams(
            dimension_semantics=("parallel",)),                     # 2nd TC on v7x
    )(x, w_slab, b_slab)


# ---------------- pure-JAX reference (mirrors the module semantics) ----------------
def _ref_sab(x, p):
    q = x @ p["wq"] + p["bq"]
    k = x @ p["wk"] + p["bk"]
    v = x @ p["wv"] + p["bv"]
    outs = []
    scale = 1.0 / jnp.sqrt(jnp.float32(DH))
    for h in range(NUM_HEADS):
        qh, kh, vh = (t[..., h * DH:(h + 1) * DH] for t in (q, k, v))
        e = jnp.sum(jnp.tanh(qh[:, :, None, :] + kh[:, None, :, :]) * p["wadd"][h], -1)
        a = jax.nn.softmax(e * scale, axis=-1)
        outs.append(jnp.einsum("bij,bjd->bid", a, vh))
    o = jnp.concatenate(outs, axis=-1)
    return x + o @ p["wo"] + p["bo"]


def ref_forward(x, params):
    x1 = jnp.tanh(x @ params["fc_w1"] + params["fc_b1"]) @ params["fc_w2"] + params["fc_b2"]
    x2 = _ref_sab(_ref_sab(x1, params["sab1"]), params["sab2"])
    q = x2 @ params["fcq_w"] + params["fcq_b"]
    k = x2 @ params["fck_w"] + params["fck_b"]
    e = jnp.sum(jnp.tanh(q[:, :, None, :] + k[:, None, :, :] + params["comp_b"][0])
                * params["comp_v"][0], axis=-1)
    return 0.5 * (e + jnp.swapaxes(e, -2, -1))


# ---------------- deterministic parameter init ----------------
def init_params(key):
    ks = iter(jax.random.split(key, 64))
    nrm = lambda shape, s=0.2: (s * jax.random.normal(next(ks), shape)).astype(jnp.float32)

    def sab_params():
        return {"wq": nrm((H, H)), "bq": nrm((1, H)),
                "wk": nrm((H, H)), "bk": nrm((1, H)),
                "wv": nrm((H, H)), "bv": nrm((1, H)),
                "wadd": nrm((NUM_HEADS, DH)),
                "wo": nrm((H, H)), "bo": nrm((1, H))}

    return {"fc_w1": nrm((D_IN, H)), "fc_b1": nrm((1, H)),
            "fc_w2": nrm((H, H)), "fc_b2": nrm((1, H)),
            "sab1": sab_params(), "sab2": sab_params(),
            "fcq_w": nrm((H, H)), "fcq_b": nrm((1, H)),
            "fck_w": nrm((H, H)), "fck_b": nrm((1, H)),
            "comp_v": nrm((1, H)), "comp_b": nrm((1, H))}


if __name__ == "__main__":
    key = jax.random.PRNGKey(0)
    k_x, k_p = jax.random.split(key)
    x = jax.random.normal(k_x, (B, N, D_IN), dtype=jnp.float32)
    params = init_params(k_p)

    # Parameter packing runs ONCE here, outside the jitted per-call path.
    w_slab, b_slab = pack_params(params)
    w_slab = jax.device_put(w_slab)
    b_slab = jax.device_put(b_slab)

    logits = jax.block_until_ready(affinity_add_forward(x, w_slab, b_slab))
    ref = ref_forward(x, params)

    assert logits.shape == (B, N, N), logits.shape
    # NOTE: pl.reciprocal(approx=True) in the softmax is a deliberate ~1e-4 deviation
    # from exact normalization; it stays within the 2e-3 tolerance below.
    assert jnp.allclose(logits, ref, rtol=2e-3, atol=2e-3), \
        float(jnp.max(jnp.abs(logits - ref)))
    # symmetry check of the affinity logits
    assert jnp.allclose(logits, jnp.swapaxes(logits, -2, -1), atol=1e-5)

    print("KERNEL_OK")
</pallas_src>

<mosaic_0001>
module attributes {stable_mosaic.version = 11 : i64} {
  func.func @affinity_add_kernel(%arg0: i32, %arg1: memref<1x8x32xf32, #tpu.memory_space<vmem>>, %arg2: memref<448x32xf32, #tpu.memory_space<vmem>>, %arg3: memref<16x32xf32, #tpu.memory_space<vmem>>, %arg4: memref<1x8x8xf32, #tpu.memory_space<vmem>>) attributes {dimension_semantics = [#tpu.dimension_semantics<parallel>], iteration_bounds = array<i64: 2>, scalar_prefetch = 0 : i64, scratch_operands = 0 : i64, tpu.core_type = #tpu.core_type<tc>, window_params = [{transform_indices = @transform_0, window_bounds = array<i64: 1, 8, 32>}, {pipeline_mode = #tpu.pipeline_mode<synchronous>, transform_indices = @transform_1, window_bounds = array<i64: 448, 32>}, {pipeline_mode = #tpu.pipeline_mode<synchronous>, transform_indices = @transform_2, window_bounds = array<i64: 16, 32>}, {transform_indices = @transform_3, window_bounds = array<i64: 1, 8, 8>}]} {
    %c0 = arith.constant 0 : index
    %c0_0 = arith.constant 0 : index
    %c0_1 = arith.constant 0 : index
    %0 = vector.load %arg1[%c0, %c0_0, %c0_1] : memref<1x8x32xf32, #tpu.memory_space<vmem>>, vector<1x8x32xf32>
    %1 = vector.shape_cast %0 : vector<1x8x32xf32> to vector<8x32xf32>
    %c0_2 = arith.constant 0 : index
    %c0_3 = arith.constant 0 : index
    %2 = vector.load %arg2[%c0_2, %c0_3] : memref<448x32xf32, #tpu.memory_space<vmem>>, vector<32x32xf32>
    %cst = arith.constant dense<0.000000e+00> : vector<8x32xf32>
    %3 = tpu.matmul %1, %2, %cst {dimension_numbers = #tpu.dot_dimension_numbers<[1], [0], [0], [1], [0, 0, 1, 1], [], []>} : vector<8x32xf32>, vector<32x32xf32>, vector<8x32xf32> -> vector<8x32xf32>
    %c0_4 = arith.constant 0 : index
    %c0_5 = arith.constant 0 : index
    %4 = vector.load %arg3[%c0_4, %c0_5] : memref<16x32xf32, #tpu.memory_space<vmem>>, vector<1x32xf32>
    %5 = vector.broadcast %4 : vector<1x32xf32> to vector<8x32xf32>
    %6 = arith.addf %3, %5 : vector<8x32xf32>
    %7 = math.tanh %6 : vector<8x32xf32>
    %c32 = arith.constant 32 : index
    %c0_6 = arith.constant 0 : index
    %8 = vector.load %arg2[%c32, %c0_6] : memref<448x32xf32, #tpu.memory_space<vmem>>, vector<32x32xf32>
    %cst_7 = arith.constant dense<0.000000e+00> : vector<8x32xf32>
    %9 = tpu.matmul %7, %8, %cst_7 {dimension_numbers = #tpu.dot_dimension_numbers<[1], [0], [0], [1], [0, 0, 1, 1], [], []>} : vector<8x32xf32>, vector<32x32xf32>, vector<8x32xf32> -> vector<8x32xf32>
    %c1 = arith.constant 1 : index
    %c0_8 = arith.constant 0 : index
    %10 = vector.load %arg3[%c1, %c0_8] : memref<16x32xf32, #tpu.memory_space<vmem>>, vector<1x32xf32>
    %11 = vector.broadcast %10 : vector<1x32xf32> to vector<8x32xf32>
    %12 = arith.addf %9, %11 : vector<8x32xf32>
    %c64 = arith.constant 64 : index
    %c0_9 = arith.constant 0 : index
    %13 = vector.load %arg2[%c64, %c0_9] : memref<448x32xf32, #tpu.memory_space<vmem>>, vector<32x32xf32>
    %cst_10 = arith.constant dense<0.000000e+00> : vector<8x32xf32>
    %14 = tpu.matmul %12, %13, %cst_10 {dimension_numbers = #tpu.dot_dimension_numbers<[1], [0], [0], [1], [0, 0, 1, 1], [], []>} : vector<8x32xf32>, vector<32x32xf32>, vector<8x32xf32> -> vector<8x32xf32>
    %c2 = arith.constant 2 : index
    %c0_11 = arith.constant 0 : index
    %15 = vector.load %arg3[%c2, %c0_11] : memref<16x32xf32, #tpu.memory_space<vmem>>, vector<1x32xf32>
    %16 = vector.broadcast %15 : vector<1x32xf32> to vector<8x32xf32>
    %17 = arith.addf %14, %16 : vector<8x32xf32>
    %c96 = arith.constant 96 : index
    %c0_12 = arith.constant 0 : index
    %18 = vector.load %arg2[%c96, %c0_12] : memref<448x32xf32, #tpu.memory_space<vmem>>, vector<32x32xf32>
    %cst_13 = arith.constant dense<0.000000e+00> : vector<8x32xf32>
    %19 = tpu.matmul %12, %18, %cst_13 {dimension_numbers = #tpu.dot_dimension_numbers<[1], [0], [0], [1], [0, 0, 1, 1], [], []>} : vector<8x32xf32>, vector<32x32xf32>, vector<8x32xf32> -> vector<8x32xf32>
    %c3 = arith.constant 3 : index
    %c0_14 = arith.constant 0 : index
    %20 = vector.load %arg3[%c3, %c0_14] : memref<16x32xf32, #tpu.memory_space<vmem>>, vector<1x32xf32>
    %21 = vector.broadcast %20 : vector<1x32xf32> to vector<8x32xf32>
    %22 = arith.addf %19, %21 : vector<8x32xf32>
    %c128 = arith.constant 128 : index
    %c0_15 = arith.constant 0 : index
    %23 = vector.load %arg2[%c128, %c0_15] : memref<448x32xf32, #tpu.memory_space<vmem>>, vector<32x32xf32>
    %cst_16 = arith.constant dense<0.000000e+00> : vector<8x32xf32>
    %24 = tpu.matmul %12, %23, %cst_16 {dimension_numbers = #tpu.dot_dimension_numbers<[1], [0], [0], [1], [0, 0, 1, 1], [], []>} : vector<8x32xf32>, vector<32x32xf32>, vector<8x32xf32> -> vector<8x32xf32>
    %c4 = arith.constant 4 : index
    %c0_17 = arith.constant 0 : index
    %25 = vector.load %arg3[%c4, %c0_17] : memref<16x32xf32, #tpu.memory_space<vmem>>, vector<1x32xf32>
    %26 = vector.broadcast %25 : vector<1x32xf32> to vector<8x32xf32>
    %27 = arith.addf %24, %26 : vector<8x32xf32>
    %28 = vector.shape_cast %17 : vector<8x32xf32> to vector<8x1x32xf32>
    %29 = vector.shape_cast %22 : vector<8x32xf32> to vector<1x8x32xf32>
    %30 = vector.broadcast %28 : vector<8x1x32xf32> to vector<8x8x32xf32>
    %31 = vector.broadcast %29 : vector<1x8x32xf32> to vector<8x8x32xf32>
    %32 = arith.addf %30, %31 : vector<8x8x32xf32>
    %33 = math.tanh %32 : vector<8x8x32xf32>
    %34 = vector.shape_cast %33 : vector<8x8x32xf32> to vector<64x32xf32>
    %c160 = arith.constant 160 : index
    %c0_18 = arith.constant 0 : index
    %35 = vector.load %arg2[%c160, %c0_18] : memref<448x32xf32, #tpu.memory_space<vmem>>, vector<32x32xf32>
    %cst_19 = arith.constant dense<0.000000e+00> : vector<64x32xf32>
    %36 = tpu.matmul %34, %35, %cst_19 {dimension_numbers = #tpu.dot_dimension_numbers<[1], [0], [0], [1], [0, 0, 1, 1], [], []>} : vector<64x32xf32>, vector<32x32xf32>, vector<64x32xf32> -> vector<64x32xf32>
    %37 = vector.shape_cast %36 : vector<64x32xf32> to vector<8x8x32xf32>
    %cst_20 = arith.constant 0.353553385 : f32
    %38 = vector.broadcast %cst_20 : f32 to vector<8x8x32xf32>
    %39 = arith.mulf %37, %38 : vector<8x8x32xf32>
    %cst_21 = arith.constant dense<0xFF800000> : vector<8x32xf32>
    %40 = vector.multi_reduction <maximumf>, %39, %cst_21 [1] : vector<8x8x32xf32> to vector<8x32xf32>
    %41 = vector.shape_cast %40 : vector<8x32xf32> to vector<8x1x32xf32>
    %42 = vector.broadcast %41 : vector<8x1x32xf32> to vector<8x8x32xf32>
    %43 = arith.subf %39, %42 : vector<8x8x32xf32>
    %44 = math.exp %43 : vector<8x8x32xf32>
    %cst_22 = arith.constant dense<0.000000e+00> : vector<8x32xf32>
    %45 = vector.multi_reduction <add>, %44, %cst_22 [1] : vector<8x8x32xf32> to vector<8x32xf32>
    %46 = vector.shape_cast %27 : vector<8x32xf32> to vector<1x8x32xf32>
    %47 = vector.broadcast %46 : vector<1x8x32xf32> to vector<8x8x32xf32>
    %48 = arith.mulf %44, %47 : vector<8x8x32xf32>
    %cst_23 = arith.constant dense<0.000000e+00> : vector<8x32xf32>
    %49 = vector.multi_reduction <add>, %48, %cst_23 [1] : vector<8x8x32xf32> to vector<8x32xf32>
    %50 = tpu.reciprocal %45 {approx = true} : vector<8x32xf32> -> vector<8x32xf32>
    %51 = arith.mulf %49, %50 : vector<8x32xf32>
    %c192 = arith.constant 192 : index
    %c0_24 = arith.constant 0 : index
    %52 = vector.load %arg2[%c192, %c0_24] : memref<448x32xf32, #tpu.memory_space<vmem>>, vector<32x32xf32>
    %cst_25 = arith.constant dense<0.000000e+00> : vector<8x32xf32>
    %53 = tpu.matmul %51, %52, %cst_25 {dimension_numbers = #tpu.dot_dimension_numbers<[1], [0], [0], [1], [0, 0, 1, 1], [], []>} : vector<8x32xf32>, vector<32x32xf32>, vector<8x32xf32> -> vector<8x32xf32>
    %54 = arith.addf %12, %53 : vector<8x32xf32>
    %c5 = arith.constant 5 : index
    %c0_26 = arith.constant 0 : index
    %55 = vector.load %arg3[%c5, %c0_26] : memref<16x32xf32, #tpu.memory_space<vmem>>, vector<1x32xf32>
    %56 = vector.broadcast %55 : vector<1x32xf32> to vector<8x32xf32>
    %57 = arith.addf %54, %56 : vector<8x32xf32>
    %c224 = arith.constant 224 : index
    %c0_27 = arith.constant 0 : index
    %58 = vector.load %arg2[%c224, %c0_27] : memref<448x32xf32, #tpu.memory_space<vmem>>, vector<32x32xf32>
    %cst_28 = arith.constant dense<0.000000e+00> : vector<8x32xf32>
    %59 = tpu.matmul %57, %58, %cst_28 {dimension_numbers = #tpu.dot_dimension_numbers<[1], [0], [0], [1], [0, 0, 1, 1], [], []>} : vector<8x32xf32>, vector<32x32xf32>, vector<8x32xf32> -> vector<8x32xf32>
    %c6 = arith.constant 6 : index
    %c0_29 = arith.constant 0 : index
    %60 = vector.load %arg3[%c6, %c0_29] : memref<16x32xf32, #tpu.memory_space<vmem>>, vector<1x32xf32>
    %61 = vector.broadcast %60 : vector<1x32xf32> to vector<8x32xf32>
    %62 = arith.addf %59, %61 : vector<8x32xf32>
    %c256 = arith.constant 256 : index
    %c0_30 = arith.constant 0 : index
    %63 = vector.load %arg2[%c256, %c0_30] : memref<448x32xf32, #tpu.memory_space<vmem>>, vector<32x32xf32>
    %cst_31 = arith.constant dense<0.000000e+00> : vector<8x32xf32>
    %64 = tpu.matmul %57, %63, %cst_31 {dimension_numbers = #tpu.dot_dimension_numbers<[1], [0], [0], [1], [0, 0, 1, 1], [], []>} : vector<8x32xf32>, vector<32x32xf32>, vector<8x32xf32> -> vector<8x32xf32>
    %c7 = arith.constant 7 : index
    %c0_32 = arith.constant 0 : index
    %65 = vector.load %arg3[%c7, %c0_32] : memref<16x32xf32, #tpu.memory_space<vmem>>, vector<1x32xf32>
    %66 = vector.broadcast %65 : vector<1x32xf32> to vector<8x32xf32>
    %67 = arith.addf %64, %66 : vector<8x32xf32>
    %c288 = arith.constant 288 : index
    %c0_33 = arith.constant 0 : index
    %68 = vector.load %arg2[%c288, %c0_33] : memref<448x32xf32, #tpu.memory_space<vmem>>, vector<32x32xf32>
    %cst_34 = arith.constant dense<0.000000e+00> : vector<8x32xf32>
    %69 = tpu.matmul %57, %68, %cst_34 {dimension_numbers = #tpu.dot_dimension_numbers<[1], [0], [0], [1], [0, 0, 1, 1], [], []>} : vector<8x32xf32>, vector<32x32xf32>, vector<8x32xf32> -> vector<8x32xf32>
    %c8 = arith.constant 8 : index
    %c0_35 = arith.constant 0 : index
    %70 = vector.load %arg3[%c8, %c0_35] : memref<16x32xf32, #tpu.memory_space<vmem>>, vector<1x32xf32>
    %71 = vector.broadcast %70 : vector<1x32xf32> to vector<8x32xf32>
    %72 = arith.addf %69, %71 : vector<8x32xf32>
    %73 = vector.shape_cast %62 : vector<8x32xf32> to vector<8x1x32xf32>
    %74 = vector.shape_cast %67 : vector<8x32xf32> to vector<1x8x32xf32>
    %75 = vector.broadcast %73 : vector<8x1x32xf32> to vector<8x8x32xf32>
    %76 = vector.broadcast %74 : vector<1x8x32xf32> to vector<8x8x32xf32>
    %77 = arith.addf %75, %76 : vector<8x8x32xf32>
    %78 = math.tanh %77 : vector<8x8x32xf32>
    %79 = vector.shape_cast %78 : vector<8x8x32xf32> to vector<64x32xf32>
    %c320 = arith.constant 320 : index
    %c0_36 = arith.constant 0 : index
    %80 = vector.load %arg2[%c320, %c0_36] : memref<448x32xf32, #tpu.memory_space<vmem>>, vector<32x32xf32>
    %cst_37 = arith.constant dense<0.000000e+00> : vector<64x32xf32>
    %81 = tpu.matmul %79, %80, %cst_37 {dimension_numbers = #tpu.dot_dimension_numbers<[1], [0], [0], [1], [0, 0, 1, 1], [], []>} : vector<64x32xf32>, vector<32x32xf32>, vector<64x32xf32> -> vector<64x32xf32>
    %82 = vector.shape_cast %81 : vector<64x32xf32> to vector<8x8x32xf32>
    %cst_38 = arith.constant 0.353553385 : f32
    %83 = vector.broadcast %cst_38 : f32 to vector<8x8x32xf32>
    %84 = arith.mulf %82, %83 : vector<8x8x32xf32>
    %cst_39 = arith.constant dense<0xFF800000> : vector<8x32xf32>
    %85 = vector.multi_reduction <maximumf>, %84, %cst_39 [1] : vector<8x8x32xf32> to vector<8x32xf32>
    %86 = vector.shape_cast %85 : vector<8x32xf32> to vector<8x1x32xf32>
    %87 = vector.broadcast %86 : vector<8x1x32xf32> to vector<8x8x32xf32>
    %88 = arith.subf %84, %87 : vector<8x8x32xf32>
    %89 = math.exp %88 : vector<8x8x32xf32>
    %cst_40 = arith.constant dense<0.000000e+00> : vector<8x32xf32>
    %90 = vector.multi_reduction <add>, %89, %cst_40 [1] : vector<8x8x32xf32> to vector<8x32xf32>
    %91 = vector.shape_cast %72 : vector<8x32xf32> to vector<1x8x32xf32>
    %92 = vector.broadcast %91 : vector<1x8x32xf32> to vector<8x8x32xf32>
    %93 = arith.mulf %89, %92 : vector<8x8x32xf32>
    %cst_41 = arith.constant dense<0.000000e+00> : vector<8x32xf32>
    %94 = vector.multi_reduction <add>, %93, %cst_41 [1] : vector<8x8x32xf32> to vector<8x32xf32>
    %95 = tpu.reciprocal %90 {approx = true} : vector<8x32xf32> -> vector<8x32xf32>
    %96 = arith.mulf %94, %95 : vector<8x32xf32>
    %c352 = arith.constant 352 : index
    %c0_42 = arith.constant 0 : index
    %97 = vector.load %arg2[%c352, %c0_42] : memref<448x32xf32, #tpu.memory_space<vmem>>, vector<32x32xf32>
    %cst_43 = arith.constant dense<0.000000e+00> : vector<8x32xf32>
    %98 = tpu.matmul %96, %97, %cst_43 {dimension_numbers = #tpu.dot_dimension_numbers<[1], [0], [0], [1], [0, 0, 1, 1], [], []>} : vector<8x32xf32>, vector<32x32xf32>, vector<8x32xf32> -> vector<8x32xf32>
    %99 = arith.addf %57, %98 : vector<8x32xf32>
    %c9 = arith.constant 9 : index
    %c0_44 = arith.constant 0 : index
    %100 = vector.load %arg3[%c9, %c0_44] : memref<16x32xf32, #tpu.memory_space<vmem>>, vector<1x32xf32>
    %101 = vector.broadcast %100 : vector<1x32xf32> to vector<8x32xf32>
    %102 = arith.addf %99, %101 : vector<8x32xf32>
    %c384 = arith.constant 384 : index
    %c0_45 = arith.constant 0 : index
    %103 = vector.load %arg2[%c384, %c0_45] : memref<448x32xf32, #tpu.memory_space<vmem>>, vector<32x32xf32>
    %cst_46 = arith.constant dense<0.000000e+00> : vector<8x32xf32>
    %104 = tpu.matmul %102, %103, %cst_46 {dimension_numbers = #tpu.dot_dimension_numbers<[1], [0], [0], [1], [0, 0, 1, 1], [], []>} : vector<8x32xf32>, vector<32x32xf32>, vector<8x32xf32> -> vector<8x32xf32>
    %c10 = arith.constant 10 : index
    %c0_47 = arith.constant 0 : index
    %105 = vector.load %arg3[%c10, %c0_47] : memref<16x32xf32, #tpu.memory_space<vmem>>, vector<1x32xf32>
    %106 = vector.broadcast %105 : vector<1x32xf32> to vector<8x32xf32>
    %107 = arith.addf %104, %106 : vector<8x32xf32>
    %c416 = arith.constant 416 : index
    %c0_48 = arith.constant 0 : index
    %108 = vector.load %arg2[%c416, %c0_48] : memref<448x32xf32, #tpu.memory_space<vmem>>, vector<32x32xf32>
    %cst_49 = arith.constant dense<0.000000e+00> : vector<8x32xf32>
    %109 = tpu.matmul %102, %108, %cst_49 {dimension_numbers = #tpu.dot_dimension_numbers<[1], [0], [0], [1], [0, 0, 1, 1], [], []>} : vector<8x32xf32>, vector<32x32xf32>, vector<8x32xf32> -> vector<8x32xf32>
    %c11 = arith.constant 11 : index
    %c0_50 = arith.constant 0 : index
    %110 = vector.load %arg3[%c11, %c0_50] : memref<16x32xf32, #tpu.memory_space<vmem>>, vector<1x32xf32>
    %111 = vector.broadcast %110 : vector<1x32xf32> to vector<8x32xf32>
    %112 = arith.addf %109, %111 : vector<8x32xf32>
    %113 = vector.shape_cast %107 : vector<8x32xf32> to vector<8x1x32xf32>
    %114 = vector.shape_cast %112 : vector<8x32xf32> to vector<1x8x32xf32>
    %115 = vector.broadcast %113 : vector<8x1x32xf32> to vector<8x8x32xf32>
    %116 = vector.broadcast %114 : vector<1x8x32xf32> to vector<8x8x32xf32>
    %117 = arith.addf %115, %116 : vector<8x8x32xf32>
    %c13 = arith.constant 13 : index
    %c0_51 = arith.constant 0 : index
    %118 = vector.load %arg3[%c13, %c0_51] : memref<16x32xf32, #tpu.memory_space<vmem>>, vector<1x32xf32>
    %119 = vector.shape_cast %118 : vector<1x32xf32> to vector<1x1x32xf32>
    %120 = vector.broadcast %119 : vector<1x1x32xf32> to vector<8x8x32xf32>
    %121 = arith.addf %117, %120 : vector<8x8x32xf32>
    %122 = math.tanh %121 : vector<8x8x32xf32>
    %c12 = arith.constant 12 : index
    %c0_52 = arith.constant 0 : index
    %123 = vector.load %arg3[%c12, %c0_52] : memref<16x32xf32, #tpu.memory_space<vmem>>, vector<1x32xf32>
    %124 = vector.shape_cast %123 : vector<1x32xf32> to vector<1x1x32xf32>
    %125 = vector.broadcast %124 : vector<1x1x32xf32> to vector<8x8x32xf32>
    %126 = arith.mulf %122, %125 : vector<8x8x32xf32>
    %cst_53 = arith.constant dense<0.000000e+00> : vector<8x8xf32>
    %127 = vector.multi_reduction <add>, %126, %cst_53 [2] : vector<8x8x32xf32> to vector<8x8xf32>
    %128 = tpu.transpose %127, [1, 0] : vector<8x8xf32> -> vector<8x8xf32>
    %129 = arith.addf %127, %128 : vector<8x8xf32>
    %cst_54 = arith.constant 5.000000e-01 : f32
    %130 = vector.broadcast %cst_54 : f32 to vector<8x8xf32>
    %131 = arith.mulf %130, %129 : vector<8x8xf32>
    %c0_55 = arith.constant 0 : index
    %c0_56 = arith.constant 0 : index
    %c0_57 = arith.constant 0 : index
    %132 = vector.load %arg4[%c0_55, %c0_56, %c0_57] : memref<1x8x8xf32, #tpu.memory_space<vmem>>, vector<1x8x8xf32>
    %133 = vector.shape_cast %132 : vector<1x8x8xf32> to vector<8x8xf32>
    %134 = vector.shape_cast %131 : vector<8x8xf32> to vector<1x8x8xf32>
    tpu.vector_store %arg4[%c0_55, %c0_56, %c0_57], %134 {strides = array<i32>} : memref<1x8x8xf32, #tpu.memory_space<vmem>>, vector<1x8x8xf32>,
    return
  }
  func.func @transform_0(%arg0: i32) -> (i32, i32, i32) {
    %c0_i32 = arith.constant 0 : i32
    %c0_i32_0 = arith.constant 0 : i32
    %c0_i32_1 = arith.constant 0 : i32
    return %arg0, %c0_i32, %c0_i32_0 : i32, i32, i32
  }
  func.func @transform_1(%arg0: i32) -> (i32, i32) {
    %c0_i32 = arith.constant 0 : i32
    %c0_i32_0 = arith.constant 0 : i32
    %c0_i32_1 = arith.constant 0 : i32
    return %c0_i32, %c0_i32_0 : i32, i32
  }
  func.func @transform_2(%arg0: i32) -> (i32, i32) {
    %c0_i32 = arith.constant 0 : i32
    %c0_i32_0 = arith.constant 0 : i32
    %c0_i32_1 = arith.constant 0 : i32
    return %c0_i32, %c0_i32_0 : i32, i32
  }
  func.func @transform_3(%arg0: i32) -> (i32, i32, i32) {
    %c0_i32 = arith.constant 0 : i32
    %c0_i32_0 = arith.constant 0 : i32
    %c0_i32_1 = arith.constant 0 : i32
    return %arg0, %c0_i32, %c0_i32_0 : i32, i32, i32
  }
}

</mosaic_0001>

<bundles_post_ra>
// kernel: affinity_add_forward.1
= control target key start
LH: loop header
LB: loop body
LE: loop exit
PB: predicated region body
PF: predicated region fallthrough
CT: control target
= control target key end

     0   :  { %8 = vsyncpa [#allocation3], 0  ;;  %s2343_s0 = inlined_call_operand.vmem [shape: f32[2,8,32], index: 0, kind: input, shape index: {}]   ;;  %s2344_s1 = inlined_call_operand.vmem [shape: f32[448,32], index: 1, kind: input, shape index: {}]   ;;  %s2345_s2 = inlined_call_operand.vmem [shape: f32[16,32], index: 2, kind: input, shape index: {}]   ;;  %s2346_s3 = inlined_call_operand.hbm [shape: f32[2,8,8], index: 3, kind: output, shape index: {}]  }
   0x1   :  { %10 = vsyncpa [#allocation3 + $0x1], 0  ;;  %s1860_s12 = smov 0   ;;  %s1862_s13 = smov 0  }
   0x2   :  { %s1864_s14 = smov 0   ;;  %s1866_s15 = smov 0  }
   0x3 LB: > { %s1881_s16 = sadd.s32 4294967295, %s1837_s15   ;;  %s1555_s17 = sadd.s32 4294967294, %s1837_s15   ;;  %s1837_s15 = sphi %s1866_s15, %s2352_s15   ;;  %s1833_s14 = sphi %s1864_s14, %s2351_s14   ;;  %s1829_s13 = sphi %s1862_s13, %s2350_s13   ;;  %s1825_s12 = sphi %s1860_s12, %s2349_s12  }
   0x4   : > { %s1885_s18 = sadd.s32 1, %s1837_s15   ;;  %s91_s19 = sadd.s32 1, %s1833_s14 }
   0x5   : > { %s88_s20 = ssub.s32 %s1837_s15, %s1885_s18  ;;  %p101_p0 = scmp.ne.s32.totalorder %s1833_s14, %s1829_s13 }
   0x6   : > { %p89_p1 = scmp.eq.s32.totalorder %s88_s20, 0  ;;  %p102_p2 = scmp.eq.s32.totalorder %s1881_s16, 1 }
   0x7   : > { %p107_p3 = scmp.ne.s32.totalorder %s1829_s13, %s1825_s12  ;;  %p108_p4 = scmp.eq.s32.totalorder %s1555_s17, 1 }
   0x8   : > { %s1896_s21 = scalar_select %p89_p1, %s1833_s14, %s91_s19  }
   0x9   : > { %p1898_p5 = por %p102_p2, %p101_p0  ;;  %p1902_p6 = por %p108_p4, %p107_p3 }
   0xa   : > { %p1558_p7 = scmp.ge.s32.totalorder %s1837_s15, 1  ;;  %p139_p8 = scmp.lt.s32.totalorder %s1837_s15, 3 }
   0xc   : > { %p140_p9 = pnand %p1558_p7, %p139_p8 }
   0xd   : > { %p162_p10 = scmp.lt.s32.totalorder (!%p140_p9), %s1881_s16, 1  ;;  %s159_s25 = sand.u32 (!%p140_p9), 1, %s1829_s13  }
   0xe   : > { %143 = sbr.rel (%p140_p9) target bundleno = 1996 (0x7cc), region = 32  ;;  %s1559_s26 = sshll.u32 (!%p140_p9), %s159_s25, 3 }
   0xf   : > { %s1590_s27 = sshll.u32 (!%p140_p9), %s1881_s16, 3  ;;  %s1795_s11 = scalar_lea.hbm (!%p140_p9), %s2346_s3, 16 }
  0x13   : > { %v170_v0 = vld [vmem:[%s2344_s1 + $0x18] sm:$0xff]  ;;  %v169_v1 = vld [vmem:[%s2344_s1 + $0x10] sm:$0xff]  ;;  %v168_v2 = vld [vmem:[%s2344_s1 + $0x8] sm:$0xff]  ;;  %s163_s30 = scalar_select %p162_p10, %s1881_s16, 1  ;;  %vm173_vm0 = vcmask 261120   ;;  %vm653_vm1 = vcmask 1041409  }
  0x14   : > { %189 = vmatpush.msra.mxu0 %v170_v0  ;;  %v167_v3 = vld [vmem:[%s2344_s1] sm:$0xff]  ;;  %v201_v5 = vld [vmem:[%s2344_s1 + $0x38] sm:$0xff]  ;;  %v200_v6 = vld [vmem:[%s2344_s1 + $0x30] sm:$0xff]  ;;  %vm655_vm2 = vcmask 1042434   ;;  %vm657_vm3 = vcmask 1043459   ;;  %vm659_vm4 = vcmask 1044484  }
  0x15   : > { %s1560_s6 = sshll.u32 %s163_s30, 3  ;;  %219 = vmatpush.msra.mxu1 %v201_v5  ;;  %v199_v7 = vld [vmem:[%s2344_s1 + $0x28] sm:$0xff]  ;;  %v198_v8 = vld [vmem:[%s2344_s1 + $0x20] sm:$0xff]  ;;  %v230_v9 = vld [vmem:[%s2344_s1 + $0x58] sm:$0xff]  ;;  %vm661_vm5 = vcmask 1045509   ;;  %vm663_vm6 = vcmask 1046534   ;;  %s1491_s30 = scalar_lea.hbm %s2346_s3, %s1590_s27 }
  0x16   : > { %190 = vmatpush.msra.mxu0 %v169_v1  ;;  %s165_s9 = scalar_lea.vmem %s2343_s0, %s1560_s6  ;;  %v259_v10 = vld [vmem:[%s2344_s1 + $0x78] sm:$0xff]  ;;  %248 = vmatpush.msra.mxu2 %v230_v9  ;;  %v229_v12 = vld [vmem:[%s2344_s1 + $0x50] sm:$0xff]  ;;  %v1647_v15 = vld [vmem:[%s2345_s2] ss:$0 sm:$0xff]  ;;  %vm665_vm7 = vcmask 1047559   ;;  %s161_s16 = scalar_lea.vmem [#allocation2], %s1559_s26 }
  0x17   : > { %v166_v4 = vld [vmem:[%s165_s9] sm:$0xff]  ;;  %220 = vmatpush.msra.mxu1 %v200_v6  ;;  %v285_v11 = vld [vmem:[%s2344_s1 + $0x98] sm:$0xff]  ;;  %274 = vmatpush.msra.mxu3 %v259_v10  ;;  %v258_v13 = vld [vmem:[%s2344_s1 + $0x70] sm:$0xff]  ;;  %s1493_s4 = sshll.u32 %s161_s16, 4  ;;  %s1495_s5 = sshll.u32 %s1491_s30, 4  ;;  %vm1478_vm8 = vcmask 64512   ;;  %s1494_s4 = int_to_ptr.vmem [resolvable:$true] %s1493_s4  ;;  %s1496_s5 = int_to_ptr.hbm [resolvable:$true] %s1495_s5 }
  0x18   : > { %191 = vmatpush.msra.mxu0 %v168_v2  ;;  %v284_v14 = vld [vmem:[%s2344_s1 + $0x90] sm:$0xff]  ;;  %249 = vmatpush.msra.mxu2 %v229_v12  ;;  %v228_v19 = vld [vmem:[%s2344_s1 + $0x48] sm:$0xff]  ;;  %v227_v22 = vld [vmem:[%s2344_s1 + $0x40] sm:$0xff]  ;;  %s1481_s6 = scalar_lea.sflag [#allocation3], %s159_s25  ;;  %s1789_s7 = sshra.s32 %s1496_s5, 4  ;;  %s1790_s7 = int_to_ptr.hbm [resolvable:$true] %s1789_s7 }
  0x19   : > { %221 = vmatpush.msra.mxu1 %v199_v7  ;;  %275 = vmatpush.msra.mxu3 %v258_v13  ;;  %v257_v20 = vld [vmem:[%s2344_s1 + $0x68] sm:$0xff]  ;;  %v256_v23 = vld [vmem:[%s2344_s1 + $0x60] sm:$0xff]  ;;  %v351_v28 = vld [vmem:[%s2344_s1 + $0xb8] sm:$0xff]  ;;  %s1791_s8 = scalar_lea.hbm %s1790_s7, 8  ;;  %p1796_p0 = scmp.lt.s32.totalorder %s1790_s7, %s2346_s3 }
  0x1a   : > { %192 = vmatpush.msra.mxu0 %v167_v3  ;;  %v283_v21 = vld [vmem:[%s2344_s1 + $0x88] sm:$0xff]  ;;  %250 = vmatpush.msra.mxu2 %v228_v19  ;;  %v282_v24 = vld [vmem:[%s2344_s1 + $0x80] sm:$0xff]  ;;  %v350_v29 = vld [vmem:[%s2344_s1 + $0xb0] sm:$0xff]  ;;  %p1792_p11 = scmp.ne.s32.totalorder %s1790_s7, %s1791_s8  ;;  %p1797_p1 = scmp.lt.s32.totalorder %s1795_s11, %s1791_s8 }
  0x1b   : > { %1561 = vmatmul.msk.f32.vlgmr.msra.gmra.mxu0 %vm173_vm0, %v166_v4  ;;  %222 = vmatpush.msra.mxu1 %v198_v8  ;;  %v1648_v25 = vld [vmem:[%s2345_s2 + $0x1] ss:$0 sm:$0xff]  ;;  %v349_v30 = vld [vmem:[%s2344_s1 + $0xa8] sm:$0xff]  ;;  %v1650_v32 = vld [vmem:[%s2345_s2 + $0x2] ss:$0 sm:$0xff] }
  0x1c   : > { %300 = vmatpush.msrb.mxu0 %v285_v11  ;;  %276 = vmatpush.msra.mxu3 %v257_v20  ;;  %v348_v31 = vld [vmem:[%s2344_s1 + $0xa0] sm:$0xff]  ;;  %p1793_p12 = pnand %p1792_p11, %p1898_p5  ;;  %p1798_p2 = por %p1797_p1, %p1796_p0 }
  0x1d   : > { %251 = vmatpush.msra.mxu2 %v227_v22  ;;  %1593 = vmatpush.msrb.mxu1 %v351_v28  ;;  %v1651_v33 = vld [vmem:[%s2345_s2 + $0x3] ss:$0 sm:$0xff] }
  0x1e   : > { %301 = vmatpush.msrb.mxu0 %v284_v14  ;;  %277 = vmatpush.msra.mxu3 %v256_v23  ;;  %p1794_p13 = pneg %p1793_p12 }
  0x1f   : > { %1594 = vmatpush.msrb.mxu1 %v350_v29 }
  0x20   : > { %302 = vmatpush.msrb.mxu0 %v283_v21  ;;  %p1799_p3 = pnand %p1798_p2, %p1794_p13 }
  0x21   : > { %1595 = vmatpush.msrb.mxu1 %v349_v30 }
  0x22   : > { %303 = vmatpush.msrb.mxu0 %v282_v24 }
  0x23   : > { %1596 = vmatpush.msrb.mxu1 %v348_v31 }
  0x24   : > { %388 = vmatpush.msra.mxu0 %v351_v28 }
  0x26   : > { %389 = vmatpush.msra.mxu0 %v350_v29 }
  0x28   : > { %390 = vmatpush.msra.mxu0 %v349_v30 }
  0x2a   : > { %391 = vmatpush.msra.mxu0 %v348_v31 }
  0x98   : > { %v194_v16 = vpop.f32.mrf.mxu0 }
  0x99   : > { %v195_v17 = vadd.f32 %v1647_v15, %v194_v16 }
  0x9b   : > { %1661 = vtanh.f32 %v195_v17 }
  0xa1   : > { %v1662_v18 = vpop.eup %1661 }
  0xa2   : > { %1562 = vmatmul.msk.f32.vlgmr.msra.gmra.mxu1 %vm173_vm0, %v1662_v18 }
 0x11f   : > { %v224_v26 = vpop.f32.mrf.mxu1 }
 0x120   : > { %v1981_v27 = vadd.f32 %v1648_v25, %v224_v26 }
 0x122   : > { %1563 = vmatmul.msk.f32.vlgmr.msra.gmra.mxu2 %vm173_vm0, %v1981_v27  ;;  %1564 = vmatmul.msk.f32.vlgmr.msra.gmra.mxu3 %vm173_vm0, %v1981_v27 }
 0x123   : > { %1565 = vmatmul.msk.f32.vlgmr.msrb.gmra.mxu0 %vm173_vm0, %v1981_v27 }
 0x1a0   : > { %v2015_v5 = vpop.f32.mrf.mxu0 }
 0x1a5   : > { %v253_v34 = vpop.f32.mrf.mxu2  ;;  %v279_v35 = vpop.f32.mrf.mxu3 }
 0x1a6   : > { %v254_v36 = vadd.f32 %v1650_v32, %v253_v34  ;;  %v280_v38 = vadd.f32 %v1651_v33, %v279_v35 }
 0x1a8   : > { %v316_v37 = vperm.slane %v254_v36, 0  ;;  %v310_v39 = vrot.slane %v254_v36, 2  ;;  %v309_v40 = vrot.slane %v254_v36, 1  ;;  %v311_v43 = vrot.slane %v254_v36, 3 }
 0x1a9   : > { %v312_v50 = vrot.slane %v254_v36, 4  ;;  %v313_v55 = vrot.slane %v254_v36, 5  ;;  %v314_v59 = vrot.slane %v254_v36, 6  ;;  %v315_v63 = vrot.slane %v254_v36, 7 }
 0x1aa   : > { %v332_v41 = vadd.f32 %v316_v37, %v280_v38  ;;  %v318_v42 = vperm.slane %v310_v39, 0  ;;  %v317_v45 = vperm.slane %v309_v40, 0  ;;  %v319_v46 = vperm.slane %v311_v43, 0 }
 0x1ab   : > { %v320_v52 = vperm.slane %v312_v50, 0  ;;  %v321_v57 = vperm.slane %v313_v55, 0  ;;  %v322_v61 = vperm.slane %v314_v59, 0  ;;  %v323_v1 = vperm.slane %v315_v63, 0 }
 0x1ac   : > { %1663 = vtanh.f32 %v332_v41  ;;  %v334_v44 = vadd.f32 %v318_v42, %v280_v38  ;;  %v333_v47 = vadd.f32 %v317_v45, %v280_v38  ;;  %v335_v49 = vadd.f32 %v319_v46, %v280_v38 }
 0x1ad   : > { %v336_v54 = vadd.f32 %v320_v52, %v280_v38  ;;  %v337_v58 = vadd.f32 %v321_v57, %v280_v38  ;;  %v338_v62 = vadd.f32 %v322_v61, %v280_v38  ;;  %v339_v2 = vadd.f32 %v323_v1, %v280_v38  ;;  %v1649_v1 = vld [vmem:[%s2345_s2 + $0x4] ss:$0 sm:$0xff] }
 0x1ae   : > { %1665 = vtanh.f32 %v334_v44 }
 0x1af   : > { %1667 = vtanh.f32 %v333_v47 }
 0x1b0   : > { %1669 = vtanh.f32 %v335_v49 }
 0x1b1   : > { %1671 = vtanh.f32 %v336_v54 }
 0x1b2   : > { %v1664_v48 = vpop.eup %1663  ;;  %1673 = vtanh.f32 %v337_v58 }
 0x1b3   : > { %1566 = vmatmul.msk.f32.vlgmr.msra.gmra.mxu0 %vm173_vm0, %v1664_v48  ;;  %1675 = vtanh.f32 %v338_v62 }
 0x1b4   : > { %v1666_v51 = vpop.eup %1665  ;;  %1677 = vtanh.f32 %v339_v2 }
 0x1b5   : > { %1568 = vmatmul.msk.f32.vlgmr.msrb.gmra.mxu1 %vm173_vm0, %v1666_v51  ;;  %v1668_v53 = vpop.eup %1667 }
 0x1b6   : > { %v1670_v56 = vpop.eup %1669 }
 0x1b7   : > { %v1672_v60 = vpop.eup %1671 }
 0x1b8   : > { %v1674_v0 = vpop.eup %1673 }
 0x1b9   : > { %v1676_v3 = vpop.eup %1675 }
 0x1ba   : > { %v1678_v4 = vpop.eup %1677 }
 0x1bb   : > { %1567 = vmatmul.msk.f32.gmra.mxu0 %vm173_vm0, %v1668_v53 }
 0x1bd   : > { %1569 = vmatmul.msk.f32.gmra.mxu1 %vm173_vm0, %v1670_v56 }
 0x1c5   : > { %1570 = vmatmul.msk.f32.gmra.mxu1 %vm173_vm0, %v1672_v60 }
 0x1cd   : > { %1571 = vmatmul.msk.f32.gmra.mxu1 %vm173_vm0, %v1674_v0 }
 0x1d5   : > { %1572 = vmatmul.msk.f32.gmra.mxu1 %vm173_vm0, %v1676_v3 }
 0x1dd   : > { %1573 = vmatmul.msk.f32.gmra.mxu1 %vm173_vm0, %v1678_v4 }
 0x230   : > { %v393_v6 = vpop.f32.mrf.mxu0 }
 0x231   : > { %v417_v7 = vmul.f32 0.35355338, %v393_v6 }
 0x232   : > { %v399_v8 = vpop.f32.mrf.mxu1 }
 0x233   : > { %v425_v9 = vsel %vm173_vm0, %v417_v7, -inf  ;;  %v419_v10 = vmul.f32 0.35355338, %v399_v8 }
 0x234   : > { %v426_v11 = vrot.slane %v425_v9, 4 }
 0x235   : > { %v439_v12 = vsel %vm173_vm0, %v419_v10, -inf }
 0x236   : > { %v427_v13 = vmax.f32 %v425_v9, %v426_v11  ;;  %v440_v14 = vrot.slane %v439_v12, 4 }
 0x238   : > { %v428_v15 = vrot.slane %v427_v13, 2  ;;  %v396_v16 = vpop.f32.mrf.mxu0  ;;  %v441_v17 = vmax.f32 %v439_v12, %v440_v14 }
 0x239   : > { %v418_v18 = vmul.f32 0.35355338, %v396_v16 }
 0x23a   : > { %v402_v19 = vpop.f32.mrf.mxu1  ;;  %v429_v22 = vmax.f32 %v427_v13, %v428_v15  ;;  %v442_v24 = vrot.slane %v441_v17, 2 }
 0x23b   : > { %v432_v20 = vsel %vm173_vm0, %v418_v18, -inf  ;;  %v420_v21 = vmul.f32 0.35355338, %v402_v19 }
 0x23c   : > { %v433_v23 = vrot.slane %v432_v20, 4  ;;  %v430_v29 = vrot.slane %v429_v22, 1  ;;  %v443_v32 = vmax.f32 %v441_v17, %v442_v24 }
 0x23d   : > { %v446_v25 = vsel %vm173_vm0, %v420_v21, -inf }
 0x23e   : > { %v434_v26 = vmax.f32 %v432_v20, %v433_v23  ;;  %v447_v28 = vrot.slane %v446_v25, 4  ;;  %v431_v37 = vmax.f32 %v429_v22, %v430_v29  ;;  %v444_v39 = vrot.slane %v443_v32, 1 }
 0x240   : > { %v435_v30 = vrot.slane %v434_v26, 2  ;;  %v448_v31 = vmax.f32 %v446_v25, %v447_v28  ;;  %v481_v43 = vsub.f32 %v417_v7, %v431_v37  ;;  %v445_v46 = vmax.f32 %v443_v32, %v444_v39 }
 0x241   : > { %v2027_v7 = vadd.f32 %v1649_v1, %v2015_v5  ;;  %v641_v1 = vld [vmem:[%s2344_s1 + $0xc0] sm:$0xff] }
 0x242   : > { %v436_v33 = vmax.f32 %v434_v26, %v435_v30  ;;  %v449_v34 = vrot.slane %v448_v31, 2  ;;  %v405_v35 = vpop.f32.mrf.mxu1  ;;  %v489_v51 = vmul.f32 1.442695, %v481_v43  ;;  %v483_v54 = vsub.f32 %v419_v10, %v445_v46 }
 0x243   : > { %v421_v36 = vmul.f32 0.35355338, %v405_v35 }
 0x244   : > { %v437_v38 = vrot.slane %v436_v33, 1  ;;  %v450_v40 = vmax.f32 %v448_v31, %v449_v34  ;;  %1679 = vpow2.f32 %v489_v51  ;;  %v493_v60 = vmul.f32 1.442695, %v483_v54 }
 0x245   : > { %v453_v41 = vsel %vm173_vm0, %v421_v36, -inf }
 0x246   : > { %v454_v42 = vrot.slane %v453_v41, 4  ;;  %v438_v44 = vmax.f32 %v436_v33, %v437_v38  ;;  %v451_v47 = vrot.slane %v450_v40, 1 }
 0x248   : > { %v455_v45 = vmax.f32 %v453_v41, %v454_v42  ;;  %v482_v52 = vsub.f32 %v418_v18, %v438_v44  ;;  %v452_v55 = vmax.f32 %v450_v40, %v451_v47 }
 0x24a   : > { %v456_v48 = vrot.slane %v455_v45, 2  ;;  %v408_v49 = vpop.f32.mrf.mxu1  ;;  %v491_v59 = vmul.f32 1.442695, %v482_v52  ;;  %v484_v61 = vsub.f32 %v420_v21, %v452_v55  ;;  %v1680_v3 = vpop.eup %1679 }
 0x24b   : > { %v422_v50 = vmul.f32 0.35355338, %v408_v49  ;;  %v561_v8 = vmul.f32 %v1680_v3, %v2027_v7  ;;  %v505_v10 = vsel %vm173_vm0, %v1680_v3, 0.0  ;;  %v644_v49 = vld [vmem:[%s2344_s1 + $0xd8] sm:$0xff] }
 0x24c   : > { %v457_v53 = vmax.f32 %v455_v45, %v456_v48  ;;  %1681 = vpow2.f32 %v491_v59  ;;  %v495_v2 = vmul.f32 1.442695, %v484_v61  ;;  %v506_v18 = vrot.slane %v505_v10, 4  ;;  %681 = vmatpush.msrb.mxu2 %v644_v49 }
 0x24d   : > { %v460_v56 = vsel %vm173_vm0, %v422_v50, -inf  ;;  %1683 = vpow2.f32 %v493_v60  ;;  %v569_v5 = vsel %vm173_vm0, %v561_v8, 0.0 }
 0x24e   : > { %v458_v57 = vrot.slane %v457_v53, 1  ;;  %v461_v58 = vrot.slane %v460_v56, 4  ;;  %1685 = vpow2.f32 %v495_v2  ;;  %v507_v32 = vadd.f32 %v506_v18, %v505_v10 }
 0x24f   : > { %v570_v33 = vrot.slane %v569_v5, 4 }
 0x250   : > { %v459_v62 = vmax.f32 %v457_v53, %v458_v57  ;;  %v462_v63 = vmax.f32 %v460_v56, %v461_v58  ;;  %v508_v45 = vrot.slane %v507_v32, 2  ;;  %v642_v57 = vld [vmem:[%s2344_s1 + $0xc8] sm:$0xff] }
 0x251   : > { %v571_v46 = vadd.f32 %v570_v33, %v569_v5 }
 0x252   : > { %v411_v0 = vpop.f32.mrf.mxu1  ;;  %v485_v4 = vsub.f32 %v421_v36, %v459_v62  ;;  %v463_v6 = vrot.slane %v462_v63, 2  ;;  %v1682_v9 = vpop.eup %1681  ;;  %v509_v61 = vadd.f32 %v508_v45, %v507_v32 }
 0x253   : > { %v1684_v14 = vpop.eup %1683  ;;  %v2031_v16 = vmul.f32 0.35355338, %v411_v0  ;;  %v512_v19 = vsel %vm173_vm0, %v1682_v9, 0.0  ;;  %v562_v26 = vmul.f32 %v1682_v9, %v2027_v7  ;;  %v572_v62 = vrot.slane %v571_v46, 2 }
 0x254   : > { %v497_v11 = vmul.f32 1.442695, %v485_v4  ;;  %v464_v12 = vmax.f32 %v462_v63, %v463_v6  ;;  %v519_v20 = vsel %vm173_vm0, %v1684_v14, 0.0  ;;  %v1686_v24 = vpop.eup %1685  ;;  %v563_v25 = vmul.f32 %v1684_v14, %v2027_v7 }
 0x255   : > { %v467_v22 = vsel %vm173_vm0, %v2031_v16, -inf  ;;  %v513_v28 = vrot.slane %v512_v19, 4  ;;  %v520_v34 = vrot.slane %v519_v20, 4  ;;  %v526_v36 = vsel %vm173_vm0, %v1686_v24, 0.0 }
 0x256   : > { %1687 = vpow2.f32 %v497_v11  ;;  %v465_v15 = vrot.slane %v464_v12, 1  ;;  %v468_v30 = vrot.slane %v467_v22, 4  ;;  %v583_v40 = vsel %vm173_vm0, %v563_v25, 0.0 }
 0x257   : > { %v514_v42 = vadd.f32 %v513_v28, %v512_v19  ;;  %v576_v43 = vsel %vm173_vm0, %v562_v26, 0.0  ;;  %v527_v47 = vrot.slane %v526_v36, 4  ;;  %v521_v51 = vadd.f32 %v520_v34, %v519_v20  ;;  %v751_v34 = vld [vmem:[%s2344_s1 + $0x138] sm:$0xff] }
 0x258   : > { %v466_v21 = vmax.f32 %v464_v12, %v465_v15  ;;  %v469_v38 = vmax.f32 %v467_v22, %v468_v30  ;;  %v564_v52 = vmul.f32 %v1686_v24, %v2027_v7  ;;  %v577_v55 = vrot.slane %v576_v43, 4 }
 0x259   : > { %v584_v58 = vrot.slane %v583_v40, 4  ;;  %v515_v59 = vrot.slane %v514_v42, 2  ;;  %v528_v63 = vadd.f32 %v527_v47, %v526_v36  ;;  %v522_v3 = vrot.slane %v521_v51, 2 }
 0x25a   : > { %v414_v13 = vpop.f32.mrf.mxu1  ;;  %v486_v29 = vsub.f32 %v422_v50, %v466_v21  ;;  %v470_v44 = vrot.slane %v469_v38, 2  ;;  %v643_v50 = vld [vmem:[%s2344_s1 + $0xd0] sm:$0xff]  ;;  %v590_v4 = vsel %vm173_vm0, %v564_v52, 0.0  ;;  %v578_v9 = vadd.f32 %v577_v55, %v576_v43 }
 0x25b   : > { %v2033_v17 = vmul.f32 0.35355338, %v414_v13  ;;  %682 = vmatpush.msrb.mxu2 %v643_v50  ;;  %v516_v13 = vadd.f32 %v515_v59, %v514_v42  ;;  %v510_v5 = vrot.slane %v509_v61, 1  ;;  %v585_v19 = vadd.f32 %v584_v58, %v583_v40 }
 0x25c   : > { %v1688_v35 = vpop.eup %1687  ;;  %v499_v37 = vmul.f32 1.442695, %v486_v29  ;;  %v471_v54 = vmax.f32 %v469_v38, %v470_v44  ;;  %v529_v20 = vrot.slane %v528_v63, 2  ;;  %v523_v22 = vadd.f32 %v522_v3, %v521_v51  ;;  %v695_v38 = vld [vmem:[%s2344_s1 + $0xf0] sm:$0xff] }
 0x25d   : > { %v474_v23 = vsel %vm173_vm0, %v2033_v17, -inf  ;;  %v533_v41 = vsel %vm173_vm0, %v1688_v35, 0.0  ;;  %683 = vmatpush.msrb.mxu2 %v642_v57  ;;  %v565_v10 = vmul.f32 %v1688_v35, %v2027_v7  ;;  %v579_v26 = vrot.slane %v578_v9, 2 }
 0x25e   : > { %v475_v31 = vrot.slane %v474_v23, 4  ;;  %1689 = vpow2.f32 %v499_v37  ;;  %v534_v53 = vrot.slane %v533_v41, 4  ;;  %v472_v60 = vrot.slane %v471_v54, 1 }
 0x25f   : > { %684 = vmatpush.msrb.mxu2 %v641_v1  ;;  %v597_v28 = vsel %vm173_vm0, %v565_v10, 0.0  ;;  %v2078_v35 = vadd.f32 %v572_v62, %v571_v46  ;;  %v586_v36 = vrot.slane %v585_v19, 2  ;;  %v530_v37 = vadd.f32 %v529_v20, %v528_v63 }
 0x260   : > { %v476_v39 = vmax.f32 %v474_v23, %v475_v31  ;;  %v535_v6 = vadd.f32 %v534_v53, %v533_v41  ;;  %v473_v8 = vmax.f32 %v471_v54, %v472_v60  ;;  %v591_v23 = vrot.slane %v590_v4, 4 }
 0x261   : > { %v517_v31 = vrot.slane %v516_v13, 1  ;;  %v598_v41 = vrot.slane %v597_v28, 4  ;;  %766 = vmatpush.msra.mxu2 %v751_v34  ;;  %v524_v42 = vrot.slane %v523_v22, 1  ;;  %v580_v43 = vadd.f32 %v579_v26, %v578_v9 }
 0x262   : > { %v477_v48 = vrot.slane %v476_v39, 2  ;;  %v487_v18 = vsub.f32 %v2031_v16, %v473_v8  ;;  %v536_v24 = vrot.slane %v535_v6, 2  ;;  %v696_v16 = vld [vmem:[%s2344_s1 + $0xf8] sm:$0xff]  ;;  %v592_v44 = vadd.f32 %v591_v23, %v590_v4 }
 0x263   : > { %714 = vmatpush.msrb.mxu3 %v696_v16  ;;  %v518_v46 = vadd.f32 %v517_v31, %v516_v13  ;;  %v531_v49 = vrot.slane %v530_v37, 1  ;;  %v587_v50 = vadd.f32 %v586_v36, %v585_v19  ;;  %v599_v52 = vadd.f32 %v598_v41, %v597_v28 }
 0x264   : > { %v478_v56 = vmax.f32 %v476_v39, %v477_v48  ;;  %v1690_v2 = vpop.eup %1689  ;;  %v501_v29 = vmul.f32 1.442695, %v487_v18  ;;  %v511_v39 = vadd.f32 %v510_v5, %v509_v61  ;;  %v537_v40 = vadd.f32 %v536_v24, %v535_v6 }
 0x265   : > { %v540_v11 = vsel %vm173_vm0, %v1690_v2, 0.0  ;;  %v566_v15 = vmul.f32 %v1690_v2, %v2027_v7  ;;  %715 = vmatpush.msrb.mxu3 %v695_v38  ;;  %v574_v48 = vrot.slane %v2078_v35, 1  ;;  %v525_v54 = vadd.f32 %v524_v42, %v523_v22 }
 0x266   : > { %v479_v0 = vrot.slane %v478_v56, 1  ;;  %v541_v14 = vrot.slane %v540_v11, 4  ;;  %1691 = vpow2.f32 %v501_v29  ;;  %v538_v51 = vrot.slane %v537_v40, 1 }
 0x267   : > { %v604_v33 = vsel %vm173_vm0, %v566_v15, 0.0  ;;  %v581_v55 = vrot.slane %v580_v43, 1  ;;  %v532_v62 = vadd.f32 %v531_v49, %v530_v37  ;;  %v600_v3 = vrot.slane %v599_v52, 2 }
 0x268   : > { %v480_v12 = vmax.f32 %v478_v56, %v479_v0  ;;  %v542_v25 = vadd.f32 %v541_v14, %v540_v11  ;;  %v605_v45 = vrot.slane %v604_v33, 4  ;;  %v593_v56 = vrot.slane %v592_v44, 2 }
 0x269   : > { %v539_v2 = vadd.f32 %v538_v51, %v537_v40  ;;  %v582_v18 = vadd.f32 %v581_v55, %v580_v43  ;;  %v588_v28 = vrot.slane %v587_v50, 1  ;;  %v575_v31 = vadd.f32 %v574_v48, %v2078_v35 }
 0x26a   : > { %v488_v21 = vsub.f32 %v2033_v17, %v480_v12  ;;  %v543_v32 = vrot.slane %v542_v25, 2  ;;  %v725_v17 = vld [vmem:[%s2344_s1 + $0x118] sm:$0xff]  ;;  %v606_v57 = vadd.f32 %v605_v45, %v604_v33  ;;  %v594_v5 = vadd.f32 %v593_v56, %v592_v44 }
 0x26b   : > { %740 = vmatpush.msrb.mxu0 %v725_v17  ;;  %v589_v43 = vadd.f32 %v588_v28, %v587_v50 }
 0x26c   : > { %v503_v30 = vmul.f32 1.442695, %v488_v21  ;;  %v544_v47 = vadd.f32 %v543_v32, %v542_v25  ;;  %v1692_v53 = vpop.eup %1691  ;;  %v607_v8 = vrot.slane %v606_v57, 2  ;;  %v601_v21 = vadd.f32 %v600_v3, %v599_v52 }
 0x26d   : > { %v547_v60 = vsel %vm173_vm0, %v1692_v53, 0.0  ;;  %v567_v61 = vmul.f32 %v1692_v53, %v2027_v7  ;;  %v595_v33 = vrot.slane %v594_v5, 1 }
 0x26e   : > { %1693 = vpow2.f32 %v503_v30  ;;  %v545_v59 = vrot.slane %v544_v47, 1  ;;  %v548_v63 = vrot.slane %v547_v60, 4  ;;  %v608_v24 = vadd.f32 %v607_v8, %v606_v57  ;;  %v694_v8 = vld [vmem:[%s2344_s1 + $0xe8] sm:$0xff] }
 0x26f   : > { %1695 = vrcp.f32 %v511_v39  ;;  %v611_v4 = vsel %vm173_vm0, %v567_v61, 0.0  ;;  %v602_v34 = vrot.slane %v601_v21, 1  ;;  %716 = vmatpush.msrb.mxu3 %v694_v8 }
 0x270   : > { %1697 = vrcp.f32 %v518_v46  ;;  %v549_v9 = vadd.f32 %v548_v63, %v547_v60  ;;  %v612_v10 = vrot.slane %v611_v4, 4  ;;  %v546_v13 = vadd.f32 %v545_v59, %v544_v47 }
 0x271   : > { %1699 = vrcp.f32 %v525_v54  ;;  %v609_v40 = vrot.slane %v608_v24, 1  ;;  %v596_v46 = vadd.f32 %v595_v33, %v594_v5  ;;  %v603_v48 = vadd.f32 %v602_v34, %v601_v21  ;;  %v1654_v21 = vld [vmem:[%s2345_s2 + $0x6] ss:$0 sm:$0xff] }
 0x272   : > { %v550_v19 = vrot.slane %v549_v9, 2  ;;  %v613_v20 = vadd.f32 %v612_v10, %v611_v4  ;;  %1701 = vrcp.f32 %v532_v62  ;;  %v724_v4 = vld [vmem:[%s2344_s1 + $0x110] sm:$0xff]  ;;  %v749_v10 = vld [vmem:[%s2344_s1 + $0x128] sm:$0xff] }
 0x273   : > { %1703 = vrcp.f32 %v539_v2  ;;  %v610_v52 = vadd.f32 %v609_v40, %v608_v24  ;;  %741 = vmatpush.msrb.mxu0 %v724_v4 }
 0x274   : > { %v1694_v58 = vpop.eup %1693  ;;  %v551_v25 = vadd.f32 %v550_v19, %v549_v9  ;;  %v614_v26 = vrot.slane %v613_v20, 2  ;;  %1705 = vrcp.f32 %v546_v13  ;;  %v723_v9 = vld [vmem:[%s2344_s1 + $0x108] sm:$0xff]  ;;  %v748_v13 = vld [vmem:[%s2344_s1 + $0x120] sm:$0xff]  ;;  %v817_v19 = vld [vmem:[%s2344_s1 + $0x158] sm:$0xff] }
 0x275   : > { %v554_v0 = vsel %vm173_vm0, %v1694_v58, 0.0  ;;  %v568_v1 = vmul.f32 %v1694_v58, %v2027_v7  ;;  %v1696_v12 = vpop.eup %1695  ;;  %742 = vmatpush.msrb.mxu0 %v723_v9 }
 0x276   : > { %v555_v6 = vrot.slane %v554_v0, 4  ;;  %v1698_v7 = vpop.eup %1697  ;;  %v552_v16 = vrot.slane %v551_v25, 1  ;;  %v615_v37 = vadd.f32 %v614_v26, %v613_v20  ;;  %v633_v38 = vmul.f32 %v1696_v12, %v575_v31  ;;  %v722_v12 = vld [vmem:[%s2344_s1 + $0x100] sm:$0xff]  ;;  %v816_v20 = vld [vmem:[%s2344_s1 + $0x150] sm:$0xff] }
 0x277   : > { %v618_v11 = vsel %vm173_vm0, %v568_v1, 0.0  ;;  %v634_v32 = vmul.f32 %v1698_v7, %v582_v18  ;;  %v1700_v17 = vpop.eup %1699  ;;  %743 = vmatpush.msrb.mxu0 %v722_v12  ;;  %v814_v7 = vld [vmem:[%s2344_s1 + $0x140] sm:$0xff] }
 0x278   : > { %v556_v14 = vadd.f32 %v555_v6, %v554_v0  ;;  %v619_v15 = vrot.slane %v618_v11, 4  ;;  %v553_v39 = vadd.f32 %v552_v16, %v551_v25  ;;  %v1702_v42 = vpop.eup %1701  ;;  %v616_v49 = vrot.slane %v615_v37, 1  ;;  %v750_v6 = vld [vmem:[%s2344_s1 + $0x130] sm:$0xff] }
 0x279   : > { %v1704_v45 = vpop.eup %1703  ;;  %v654_v35 = vsel %vm653_vm1, %v634_v32, %v633_v38  ;;  %v635_v51 = vmul.f32 %v1700_v17, %v589_v43  ;;  %v636_v54 = vmul.f32 %v1702_v42, %v596_v46  ;;  %767 = vmatpush.msra.mxu2 %v750_v6 }
 0x27a   : > { %v557_v22 = vrot.slane %v556_v14, 2  ;;  %v620_v23 = vadd.f32 %v619_v15, %v618_v11  ;;  %1707 = vrcp.f32 %v553_v39  ;;  %v1706_v47 = vpop.eup %1705  ;;  %v637_v55 = vmul.f32 %v1704_v45, %v603_v48  ;;  %v693_v11 = vld [vmem:[%s2344_s1 + $0xe0] sm:$0xff] }
 0x27b   : > { %v656_v56 = vsel %vm655_vm2, %v635_v51, %v654_v35  ;;  %v638_v50 = vmul.f32 %v1706_v47, %v610_v52  ;;  %v617_v57 = vadd.f32 %v616_v49, %v615_v37  ;;  %768 = vmatpush.msra.mxu2 %v749_v10  ;;  %717 = vmatpush.msrb.mxu3 %v693_v11 }
 0x27c   : > { %v558_v29 = vadd.f32 %v557_v22, %v556_v14  ;;  %v621_v30 = vrot.slane %v620_v23, 2  ;;  %v658_v60 = vsel %vm657_vm3, %v636_v54, %v656_v56  ;;  %v1652_v14 = vld [vmem:[%s2345_s2 + $0x5] ss:$0 sm:$0xff]  ;;  %v1653_v22 = vld [vmem:[%s2345_s2 + $0x7] ss:$0 sm:$0xff] }
 0x27d   : > { %v660_v63 = vsel %vm659_vm4, %v637_v55, %v658_v60  ;;  %769 = vmatpush.msra.mxu2 %v748_v13  ;;  %1597 = vmatpush.msra.mxu3 %v817_v19 }
 0x27e   : > { %v559_v36 = vrot.slane %v558_v29, 1  ;;  %v622_v41 = vadd.f32 %v621_v30, %v620_v23  ;;  %v662_v1 = vsel %vm661_vm5, %v638_v50, %v660_v63 }
 0x27f   : > { %1598 = vmatpush.msra.mxu3 %v816_v20 }
 0x280   : > { %v560_v44 = vadd.f32 %v559_v36, %v558_v29  ;;  %v623_v53 = vrot.slane %v622_v41, 1  ;;  %v1708_v58 = vpop.eup %1707 }
 0x281   : > { %v639_v62 = vmul.f32 %v1708_v58, %v617_v57 }
 0x282   : > { %1709 = vrcp.f32 %v560_v44  ;;  %v624_v59 = vadd.f32 %v623_v53, %v622_v41 }
 0x283   : > { %v664_v2 = vsel %vm663_vm6, %v639_v62, %v662_v1 }
 0x288   : > { %v1710_v61 = vpop.eup %1709 }
 0x289   : > { %v640_v0 = vmul.f32 %v1710_v61, %v624_v59 }
 0x28b   : > { %v666_v3 = vsel %vm665_vm7, %v640_v0, %v664_v2 }
 0x28c   : > { %1574 = vmatmul.msk.f32.vlgmr.msrb.gmra.mxu2 %vm173_vm0, %v666_v3 }
 0x28d   : > { %854 = vmatpush.msrb.mxu2 %v817_v19 }
 0x28f   : > { %855 = vmatpush.msrb.mxu2 %v816_v20 }
 0x30f   : > { %v686_v15 = vpop.f32.mrf.mxu2 }
 0x310   : > { %v689_v18 = vadd.f32 %v686_v15, %v1981_v27  ;;  %v815_v27 = vld [vmem:[%s2344_s1 + $0x148] sm:$0xff] }
 0x311   : > { %856 = vmatpush.msrb.mxu2 %v815_v27  ;;  %1599 = vmatpush.msra.mxu3 %v815_v27 }
 0x312   : > { %v2127_v5 = vadd.f32 %v1652_v14, %v689_v18 }
 0x313   : > { %857 = vmatpush.msrb.mxu2 %v814_v7  ;;  %1600 = vmatpush.msra.mxu3 %v814_v7 }
 0x314   : > { %1575 = vmatmul.msk.f32.vlgmr.msrb.gmra.mxu3 %vm173_vm0, %v2127_v5  ;;  %1576 = vmatmul.msk.f32.vlgmr.msrb.gmra.mxu0 %vm173_vm0, %v2127_v5 }
 0x315   : > { %1577 = vmatmul.msk.f32.vlgmr.msra.gmra.mxu2 %vm173_vm0, %v2127_v5 }
 0x391   : > { %v745_v23 = vpop.f32.mrf.mxu0 }
 0x392   : > { %v746_v26 = vadd.f32 %v1653_v22, %v745_v23 }
 0x397   : > { %v719_v24 = vpop.f32.mrf.mxu3 }
 0x398   : > { %v720_v25 = vadd.f32 %v1654_v21, %v719_v24  ;;  %v2161_v57 = vpop.f32.mrf.mxu2 }
 0x39a   : > { %v777_v28 = vrot.slane %v720_v25, 3  ;;  %v782_v29 = vperm.slane %v720_v25, 0  ;;  %v775_v30 = vrot.slane %v720_v25, 1  ;;  %v778_v33 = vrot.slane %v720_v25, 4 }
 0x39b   : > { %v776_v37 = vrot.slane %v720_v25, 2  ;;  %v779_v40 = vrot.slane %v720_v25, 5  ;;  %v780_v35 = vrot.slane %v720_v25, 6  ;;  %v781_v52 = vrot.slane %v720_v25, 7 }
 0x39c   : > { %v785_v31 = vperm.slane %v777_v28, 0  ;;  %v798_v32 = vadd.f32 %v782_v29, %v746_v26  ;;  %v783_v17 = vperm.slane %v775_v30, 0  ;;  %v786_v34 = vperm.slane %v778_v33, 0 }
 0x39d   : > { %v784_v42 = vperm.slane %v776_v37, 0  ;;  %v787_v43 = vperm.slane %v779_v40, 0  ;;  %v788_v48 = vperm.slane %v780_v35, 0  ;;  %v789_v54 = vperm.slane %v781_v52, 0 }
 0x39e   : > { %v801_v16 = vadd.f32 %v785_v31, %v746_v26  ;;  %1711 = vtanh.f32 %v798_v32  ;;  %v799_v36 = vadd.f32 %v783_v17, %v746_v26  ;;  %v802_v39 = vadd.f32 %v786_v34, %v746_v26 }
 0x39f   : > { %v800_v44 = vadd.f32 %v784_v42, %v746_v26  ;;  %v803_v46 = vadd.f32 %v787_v43, %v746_v26  ;;  %v804_v51 = vadd.f32 %v788_v48, %v746_v26  ;;  %v805_v55 = vadd.f32 %v789_v54, %v746_v26 }
 0x3a0   : > { %1713 = vtanh.f32 %v801_v16 }
 0x3a1   : > { %1715 = vtanh.f32 %v799_v36 }
 0x3a2   : > { %1717 = vtanh.f32 %v802_v39 }
 0x3a3   : > { %1719 = vtanh.f32 %v800_v44 }
 0x3a4   : > { %v1712_v38 = vpop.eup %1711  ;;  %1721 = vtanh.f32 %v803_v46 }
 0x3a5   : > { %1578 = vmatmul.msk.f32.vlgmr.msrb.gmra.mxu2 %vm173_vm0, %v1712_v38  ;;  %1723 = vtanh.f32 %v804_v51 }
 0x3a6   : > { %v1714_v41 = vpop.eup %1713  ;;  %1725 = vtanh.f32 %v805_v55 }
 0x3a7   : > { %1581 = vmatmul.msk.f32.vlgmr.msra.gmra.mxu3 %vm173_vm0, %v1714_v41  ;;  %v1716_v45 = vpop.eup %1715 }
 0x3a8   : > { %v1718_v47 = vpop.eup %1717 }
 0x3a9   : > { %v1720_v49 = vpop.eup %1719 }
 0x3aa   : > { %v1722_v53 = vpop.eup %1721 }
 0x3ab   : > { %v1724_v56 = vpop.eup %1723 }
 0x3ac   : > { %v1726_v50 = vpop.eup %1725 }
 0x3ad   : > { %1579 = vmatmul.msk.f32.gmra.mxu2 %vm173_vm0, %v1716_v45 }
 0x3af   : > { %1582 = vmatmul.msk.f32.gmra.mxu3 %vm173_vm0, %v1718_v47 }
 0x3b5   : > { %1580 = vmatmul.msk.f32.gmra.mxu2 %vm173_vm0, %v1720_v49 }
 0x3b7   : > { %1583 = vmatmul.msk.f32.gmra.mxu3 %vm173_vm0, %v1722_v53 }
 0x3bf   : > { %1584 = vmatmul.msk.f32.gmra.mxu3 %vm173_vm0, %v1724_v56 }
 0x3c7   : > { %1585 = vmatmul.msk.f32.gmra.mxu3 %vm173_vm0, %v1726_v50 }
 0x428   : > { %v859_v58 = vpop.f32.mrf.mxu2 }
 0x429   : > { %v883_v59 = vmul.f32 0.35355338, %v859_v58 }
 0x42a   : > { %v868_v60 = vpop.f32.mrf.mxu3 }
 0x42b   : > { %v891_v61 = vsel %vm173_vm0, %v883_v59, -inf  ;;  %v886_v62 = vmul.f32 0.35355338, %v868_v60 }
 0x42c   : > { %v892_v63 = vrot.slane %v891_v61, 4 }
 0x42d   : > { %v912_v0 = vsel %vm173_vm0, %v886_v62, -inf }
 0x42e   : > { %v893_v1 = vmax.f32 %v891_v61, %v892_v63  ;;  %v913_v2 = vrot.slane %v912_v0, 4 }
 0x430   : > { %v862_v3 = vpop.f32.mrf.mxu2  ;;  %v894_v4 = vrot.slane %v893_v1, 2  ;;  %v914_v8 = vmax.f32 %v912_v0, %v913_v2 }
 0x431   : > { %v884_v6 = vmul.f32 0.35355338, %v862_v3 }
 0x432   : > { %v871_v9 = vpop.f32.mrf.mxu3  ;;  %v895_v13 = vmax.f32 %v893_v1, %v894_v4  ;;  %v915_v15 = vrot.slane %v914_v8, 2 }
 0x433   : > { %v898_v10 = vsel %vm173_vm0, %v884_v6, -inf  ;;  %v887_v11 = vmul.f32 0.35355338, %v871_v9 }
 0x434   : > { %v899_v12 = vrot.slane %v898_v10, 4  ;;  %v896_v21 = vrot.slane %v895_v13, 1  ;;  %v916_v23 = vmax.f32 %v914_v8, %v915_v15 }
 0x435   : > { %v919_v14 = vsel %vm173_vm0, %v887_v11, -inf }
 0x436   : > { %v900_v18 = vmax.f32 %v898_v10, %v899_v12  ;;  %v920_v19 = vrot.slane %v919_v14, 4  ;;  %v897_v32 = vmax.f32 %v895_v13, %v896_v21  ;;  %v917_v17 = vrot.slane %v916_v23, 1 }
 0x438   : > { %v901_v20 = vrot.slane %v900_v18, 2  ;;  %v921_v27 = vmax.f32 %v919_v14, %v920_v19  ;;  %v865_v7 = vpop.f32.mrf.mxu2  ;;  %v947_v41 = vsub.f32 %v883_v59, %v897_v32  ;;  %v918_v43 = vmax.f32 %v916_v23, %v917_v17 }
 0x439   : > { %v885_v22 = vmul.f32 0.35355338, %v865_v7 }
 0x43a   : > { %v902_v24 = vmax.f32 %v900_v18, %v901_v20  ;;  %v922_v25 = vrot.slane %v921_v27, 2  ;;  %v874_v26 = vpop.f32.mrf.mxu3  ;;  %v955_v49 = vmul.f32 1.442695, %v947_v41  ;;  %v950_v52 = vsub.f32 %v886_v62, %v918_v43  ;;  %v1655_v62 = vld [vmem:[%s2345_s2 + $0x8] ss:$0 sm:$0xff] }
 0x43b   : > { %v905_v28 = vsel %vm173_vm0, %v885_v22, -inf  ;;  %v888_v29 = vmul.f32 0.35355338, %v874_v26 }
 0x43c   : > { %v903_v30 = vrot.slane %v902_v24, 1  ;;  %v923_v31 = vmax.f32 %v921_v27, %v922_v25  ;;  %v906_v33 = vrot.slane %v905_v28, 4  ;;  %v961_v50 = vmul.f32 1.442695, %v950_v52 }
 0x43d   : > { %v926_v16 = vsel %vm173_vm0, %v888_v29, -inf }
 0x43e   : > { %v904_v34 = vmax.f32 %v902_v24, %v903_v30  ;;  %v927_v36 = vrot.slane %v926_v16, 4  ;;  %v924_v37 = vrot.slane %v923_v31, 1  ;;  %v907_v38 = vmax.f32 %v905_v28, %v906_v33 }
 0x440   : > { %v948_v39 = vsub.f32 %v884_v6, %v904_v34  ;;  %v928_v40 = vmax.f32 %v926_v16, %v927_v36  ;;  %v908_v42 = vrot.slane %v907_v38, 2  ;;  %v925_v45 = vmax.f32 %v923_v31, %v924_v37 }
 0x442   : > { %v929_v44 = vrot.slane %v928_v40, 2  ;;  %v909_v46 = vmax.f32 %v907_v38, %v908_v42  ;;  %v957_v35 = vmul.f32 1.442695, %v948_v39  ;;  %v877_v48 = vpop.f32.mrf.mxu3  ;;  %v951_v53 = vsub.f32 %v887_v11, %v925_v45  ;;  %v1110_v45 = vld [vmem:[%s2344_s1 + $0x178] sm:$0xff] }
 0x443   : > { %v2169_v55 = vmul.f32 0.35355338, %v877_v48  ;;  %v2179_v11 = vadd.f32 %v1655_v62, %v2161_v57  ;;  %1140 = vmatpush.msra.mxu0 %v1110_v45 }
 0x444   : > { %v930_v47 = vmax.f32 %v928_v40, %v929_v44  ;;  %v910_v51 = vrot.slane %v909_v46, 1  ;;  %1727 = vpow2.f32 %v957_v35  ;;  %v963_v59 = vmul.f32 1.442695, %v951_v53 }
 0x445   : > { %1729 = vpow2.f32 %v955_v49  ;;  %v933_v60 = vsel %vm173_vm0, %v2169_v55, -inf }
 0x446   : > { %v931_v54 = vrot.slane %v930_v47, 1  ;;  %v911_v56 = vmax.f32 %v909_v46, %v910_v51  ;;  %1731 = vpow2.f32 %v961_v50  ;;  %v934_v1 = vrot.slane %v933_v60, 4  ;;  %v1109_v46 = vld [vmem:[%s2344_s1 + $0x170] sm:$0xff] }
 0x447   : > { %1733 = vpow2.f32 %v963_v59  ;;  %1141 = vmatpush.msra.mxu0 %v1109_v46 }
 0x448   : > { %v932_v58 = vmax.f32 %v930_v47, %v931_v54  ;;  %v949_v61 = vsub.f32 %v885_v22, %v911_v56  ;;  %v935_v10 = vmax.f32 %v933_v60, %v934_v1 }
 0x44a   : > { %v1728_v63 = vpop.eup %1727  ;;  %v952_v0 = vsub.f32 %v888_v29, %v932_v58  ;;  %v959_v3 = vmul.f32 1.442695, %v949_v61  ;;  %v880_v6 = vpop.f32.mrf.mxu3  ;;  %v936_v14 = vrot.slane %v935_v10, 2 }
 0x44b   : > { %v1730_v2 = vpop.eup %1729  ;;  %v978_v4 = vsel %vm173_vm0, %v1728_v63, 0.0  ;;  %v2181_v15 = vmul.f32 0.35355338, %v880_v6  ;;  %v1028_v26 = vmul.f32 %v1728_v63, %v2179_v11 }
 0x44c   : > { %v971_v8 = vsel %vm173_vm0, %v1730_v2, 0.0  ;;  %v965_v9 = vmul.f32 1.442695, %v952_v0  ;;  %v1732_v12 = vpop.eup %1731  ;;  %v979_v13 = vrot.slane %v978_v4, 4  ;;  %1735 = vpow2.f32 %v959_v3  ;;  %v1107_v0 = vld [vmem:[%s2344_s1 + $0x160] sm:$0xff] }
 0x44d   : > { %v1734_v18 = vpop.eup %1733  ;;  %v972_v19 = vrot.slane %v971_v8, 4  ;;  %v1027_v20 = vmul.f32 %v1730_v2, %v2179_v11  ;;  %v937_v27 = vmax.f32 %v935_v10, %v936_v14  ;;  %v940_v7 = vsel %vm173_vm0, %v2181_v15, -inf }
 0x44e   : > { %1737 = vpow2.f32 %v965_v9  ;;  %v992_v21 = vsel %vm173_vm0, %v1732_v12, 0.0  ;;  %v980_v22 = vadd.f32 %v979_v13, %v978_v4  ;;  %v999_v57 = vsel %vm173_vm0, %v1734_v18, 0.0 }
 0x44f   : > { %v938_v23 = vrot.slane %v937_v27, 1  ;;  %v941_v24 = vrot.slane %v940_v7, 4  ;;  %v973_v25 = vadd.f32 %v972_v19, %v971_v8  ;;  %v1035_v29 = vsel %vm173_vm0, %v1027_v20, 0.0 }
 0x450   : > { %v1030_v30 = vmul.f32 %v1732_v12, %v2179_v11  ;;  %v993_v33 = vrot.slane %v992_v21, 4  ;;  %v1000_v16 = vrot.slane %v999_v57, 4  ;;  %v981_v37 = vrot.slane %v980_v22, 2 }
 0x451   : > { %v939_v31 = vmax.f32 %v937_v27, %v938_v23  ;;  %v942_v32 = vmax.f32 %v940_v7, %v941_v24  ;;  %v974_v41 = vrot.slane %v973_v25, 2  ;;  %v1036_v42 = vrot.slane %v1035_v29, 4 }
 0x452   : > { %v1736_v28 = vpop.eup %1735  ;;  %v1042_v43 = vsel %vm173_vm0, %v1028_v26, 0.0  ;;  %v994_v51 = vadd.f32 %v993_v33, %v992_v21  ;;  %v1056_v52 = vsel %vm173_vm0, %v1030_v30, 0.0  ;;  %v1031_v53 = vmul.f32 %v1734_v18, %v2179_v11  ;;  %v1155_v26 = vld [vmem:[%s2344_s1 + $0x198] sm:$0xff] }
 0x453   : > { %v985_v17 = vsel %vm173_vm0, %v1736_v28, 0.0  ;;  %v1029_v34 = vmul.f32 %v1736_v28, %v2179_v11  ;;  %v953_v39 = vsub.f32 %v2169_v55, %v939_v31  ;;  %v943_v40 = vrot.slane %v942_v32, 2  ;;  %v1108_v55 = vld [vmem:[%s2344_s1 + $0x168] sm:$0xff]  ;;  %v1154_v28 = vld [vmem:[%s2344_s1 + $0x190] sm:$0xff]  ;;  %1173 = vmatpush.msra.mxu2 %v1155_v26 }
 0x454   : > { %v1738_v36 = vpop.eup %1737  ;;  %v986_v38 = vrot.slane %v985_v17, 4  ;;  %v982_v56 = vadd.f32 %v981_v37, %v980_v22  ;;  %v1043_v50 = vrot.slane %v1042_v43, 4  ;;  %v1001_v58 = vadd.f32 %v1000_v16, %v999_v57  ;;  %1142 = vmatpush.msra.mxu0 %v1108_v55 }
 0x455   : > { %v1006_v44 = vsel %vm173_vm0, %v1738_v36, 0.0  ;;  %v1049_v47 = vsel %vm173_vm0, %v1029_v34, 0.0  ;;  %v967_v49 = vmul.f32 1.442695, %v953_v39  ;;  %v944_v54 = vmax.f32 %v942_v32, %v943_v40  ;;  %v1184_v32 = vld [vmem:[%s2344_s1 + $0x1b8] sm:$0xff]  ;;  %v1153_v34 = vld [vmem:[%s2344_s1 + $0x188] sm:$0xff]  ;;  %1174 = vmatpush.msra.mxu2 %v1154_v28 }
 0x456   : > { %v987_v35 = vadd.f32 %v986_v38, %v985_v17  ;;  %v1007_v48 = vrot.slane %v1006_v44, 4  ;;  %v1037_v60 = vadd.f32 %v1036_v42, %v1035_v29  ;;  %v1050_v61 = vrot.slane %v1049_v47, 4  ;;  %1143 = vmatpush.msra.mxu0 %v1107_v0 }
 0x457   : > { %1739 = vpow2.f32 %v967_v49  ;;  %v945_v63 = vrot.slane %v944_v54, 1  ;;  %v975_v1 = vadd.f32 %v974_v41, %v973_v25  ;;  %v1057_v2 = vrot.slane %v1056_v52, 4  ;;  %1175 = vmatpush.msra.mxu2 %v1153_v34 }
 0x458   : > { %v988_v59 = vrot.slane %v987_v35, 2  ;;  %v1008_v3 = vadd.f32 %v1007_v48, %v1006_v44  ;;  %v995_v4 = vrot.slane %v994_v51, 2  ;;  %v1032_v6 = vmul.f32 %v1738_v36, %v2179_v11  ;;  %1199 = vmatpush.msrb.mxu0 %v1184_v32  ;;  %v1152_v44 = vld [vmem:[%s2344_s1 + $0x180] sm:$0xff] }
 0x459   : > { %v946_v8 = vmax.f32 %v944_v54, %v945_v63  ;;  %v983_v9 = vrot.slane %v982_v56, 1  ;;  %v1044_v10 = vadd.f32 %v1043_v50, %v1042_v43  ;;  %v1002_v12 = vrot.slane %v1001_v58, 2  ;;  %1176 = vmatpush.msra.mxu2 %v1152_v44 }
 0x45a   : > { %v989_v62 = vadd.f32 %v988_v59, %v987_v35  ;;  %v1063_v13 = vsel %vm173_vm0, %v1031_v53, 0.0  ;;  %v1038_v14 = vrot.slane %v1037_v60, 2  ;;  %v1051_v18 = vadd.f32 %v1050_v61, %v1049_v47 }
 0x45b   : > { %v954_v19 = vsub.f32 %v2181_v15, %v946_v8  ;;  %v976_v20 = vrot.slane %v975_v1, 1  ;;  %v1058_v27 = vadd.f32 %v1057_v2, %v1056_v52  ;;  %v1009_v21 = vrot.slane %v1008_v3, 2 }
 0x45c   : > { %v990_v7 = vrot.slane %v989_v62, 1  ;;  %v996_v57 = vadd.f32 %v995_v4, %v994_v51  ;;  %v1064_v23 = vrot.slane %v1063_v13, 4  ;;  %v1070_v24 = vsel %vm173_vm0, %v1032_v6, 0.0 }
 0x45d   : > { %v1740_v22 = vpop.eup %1739  ;;  %v969_v25 = vmul.f32 1.442695, %v954_v19  ;;  %v984_v29 = vadd.f32 %v983_v9, %v982_v56  ;;  %v1045_v15 = vrot.slane %v1044_v10, 2  ;;  %v1003_v30 = vadd.f32 %v1002_v12, %v1001_v58 }
 0x45e   : > { %v1013_v31 = vsel %vm173_vm0, %v1740_v22, 0.0  ;;  %v1052_v33 = vrot.slane %v1051_v18, 2  ;;  %v1033_v17 = vmul.f32 %v1740_v22, %v2179_v11  ;;  %v1039_v36 = vadd.f32 %v1038_v14, %v1037_v60 }
 0x45f   : > { %v1014_v16 = vrot.slane %v1013_v31, 4  ;;  %1741 = vpow2.f32 %v969_v25  ;;  %v991_v37 = vadd.f32 %v990_v7, %v989_v62  ;;  %v1010_v38 = vadd.f32 %v1009_v21, %v1008_v3 }
 0x460   : > { %v1071_v39 = vrot.slane %v1070_v24, 4  ;;  %v977_v40 = vadd.f32 %v976_v20, %v975_v1  ;;  %v997_v41 = vrot.slane %v996_v57, 1  ;;  %v1077_v43 = vsel %vm173_vm0, %v1033_v17, 0.0 }
 0x461   : > { %v1015_v42 = vadd.f32 %v1014_v16, %v1013_v31  ;;  %v1059_v45 = vrot.slane %v1058_v27, 2  ;;  %v1046_v46 = vadd.f32 %v1045_v15, %v1044_v10  ;;  %v1065_v35 = vadd.f32 %v1064_v23, %v1063_v13 }
 0x462   : > { %v1078_v47 = vrot.slane %v1077_v43, 4  ;;  %1743 = vrcp.f32 %v984_v29  ;;  %v1004_v48 = vrot.slane %v1003_v30, 1  ;;  %v1053_v49 = vadd.f32 %v1052_v33, %v1051_v18 }
 0x463   : > { %v1016_v51 = vrot.slane %v1015_v42, 2  ;;  %v1040_v52 = vrot.slane %v1039_v36, 1  ;;  %1745 = vrcp.f32 %v991_v37  ;;  %v1011_v53 = vrot.slane %v1010_v38, 1 }
 0x464   : > { %v1072_v54 = vadd.f32 %v1071_v39, %v1070_v24  ;;  %1747 = vrcp.f32 %v977_v40  ;;  %v998_v56 = vadd.f32 %v997_v41, %v996_v57  ;;  %v1079_v58 = vadd.f32 %v1078_v47, %v1077_v43 }
 0x465   : > { %v1742_v55 = vpop.eup %1741  ;;  %v1017_v50 = vadd.f32 %v1016_v51, %v1015_v42  ;;  %v1047_v59 = vrot.slane %v1046_v46, 1  ;;  %v1066_v60 = vrot.slane %v1065_v35, 2  ;;  %v1005_v0 = vadd.f32 %v1004_v48, %v1003_v30 }
 0x466   : > { %v1020_v61 = vsel %vm173_vm0, %v1742_v55, 0.0  ;;  %v1034_v63 = vmul.f32 %v1742_v55, %v2179_v11  ;;  %v1054_v1 = vrot.slane %v1053_v49, 1  ;;  %v1060_v3 = vadd.f32 %v1059_v45, %v1058_v27 }
 0x467   : > { %v1018_v2 = vrot.slane %v1017_v50, 1  ;;  %v1021_v62 = vrot.slane %v1020_v61, 4  ;;  %v1012_v4 = vadd.f32 %v1011_v53, %v1010_v38  ;;  %v1073_v6 = vrot.slane %v1072_v54, 2 }
 0x468   : > { %v1084_v8 = vsel %vm173_vm0, %v1034_v63, 0.0  ;;  %v1744_v9 = vpop.eup %1743  ;;  %1749 = vrcp.f32 %v998_v56  ;;  %v1080_v10 = vrot.slane %v1079_v58, 2  ;;  %v1041_v18 = vadd.f32 %v1040_v52, %v1039_v36 }
 0x469   : > { %v1022_v12 = vadd.f32 %v1021_v62, %v1020_v61  ;;  %v1085_v13 = vrot.slane %v1084_v8, 4  ;;  %v1746_v14 = vpop.eup %1745  ;;  %v1048_v19 = vadd.f32 %v1047_v59, %v1046_v46  ;;  %v1067_v20 = vadd.f32 %v1066_v60, %v1065_v35  ;;  %v1182_v59 = vld [vmem:[%s2344_s1 + $0x1a8] sm:$0xff]  ;;  %v1181_v60 = vld [vmem:[%s2344_s1 + $0x1a0] sm:$0xff] }
 0x46a   : > { %v1019_v7 = vadd.f32 %v1018_v2, %v1017_v50  ;;  %v1748_v11 = vpop.eup %1747  ;;  %1751 = vrcp.f32 %v1005_v0  ;;  %v1055_v21 = vadd.f32 %v1054_v1, %v1053_v49  ;;  %v1061_v27 = vrot.slane %v1060_v3, 1  ;;  %v1656_v61 = vld [vmem:[%s2345_s2 + $0x9] ss:$0 sm:$0xff]  ;;  %v1658_v2 = vld [vmem:[%s2345_s2 + $0xa] ss:$0 sm:$0xff] }
 0x46b   : > { %v1023_v22 = vrot.slane %v1022_v12, 2  ;;  %v1086_v57 = vadd.f32 %v1085_v13, %v1084_v8  ;;  %v1100_v23 = vmul.f32 %v1744_v9, %v1048_v19  ;;  %v1074_v24 = vadd.f32 %v1073_v6, %v1072_v54  ;;  %v1657_v62 = vld [vmem:[%s2345_s2 + $0xb] ss:$0 sm:$0xff] }
 0x46c   : > { %1753 = vrcp.f32 %v1012_v4  ;;  %v1101_v25 = vmul.f32 %v1746_v14, %v1055_v21  ;;  %v1081_v26 = vadd.f32 %v1080_v10, %v1079_v58  ;;  %v1099_v15 = vmul.f32 %v1748_v11, %v1041_v18  ;;  %v1183_v58 = vld [vmem:[%s2344_s1 + $0x1b0] sm:$0xff] }
 0x46d   : > { %v1024_v28 = vadd.f32 %v1023_v22, %v1022_v12  ;;  %v1087_v29 = vrot.slane %v1086_v57, 2  ;;  %1755 = vrcp.f32 %v1019_v7  ;;  %v1068_v31 = vrot.slane %v1067_v20, 1  ;;  %1200 = vmatpush.msrb.mxu0 %v1183_v58 }
 0x46e   : > { %v1750_v30 = vpop.eup %1749  ;;  %v1062_v33 = vadd.f32 %v1061_v27, %v1060_v3  ;;  %v1075_v16 = vrot.slane %v1074_v24, 1  ;;  %v1119_v34 = vsel %vm653_vm1, %v1100_v23, %v1099_v15  ;;  %v1082_v38 = vrot.slane %v1081_v26, 1 }
 0x46f   : > { %v1025_v32 = vrot.slane %v1024_v28, 1  ;;  %v1088_v17 = vadd.f32 %v1087_v29, %v1086_v57  ;;  %v1120_v39 = vsel %vm655_vm2, %v1101_v25, %v1119_v34  ;;  %v1069_v42 = vadd.f32 %v1068_v31, %v1067_v20  ;;  %1201 = vmatpush.msrb.mxu0 %v1182_v59 }
 0x470   : > { %v1752_v36 = vpop.eup %1751  ;;  %v1102_v41 = vmul.f32 %v1750_v30, %v1062_v33  ;;  %v1076_v44 = vadd.f32 %v1075_v16, %v1074_v24  ;;  %v1083_v35 = vadd.f32 %v1082_v38, %v1081_v26  ;;  %v1660_v16 = vld [vmem:[%s2345_s2 + $0xc] ss:$0 sm:$0xff] }
 0x471   : > { %v1026_v37 = vadd.f32 %v1025_v32, %v1024_v28  ;;  %v1089_v45 = vrot.slane %v1088_v17, 1  ;;  %v1103_v47 = vmul.f32 %v1752_v36, %v1069_v42  ;;  %1202 = vmatpush.msrb.mxu0 %v1181_v60 }
 0x472   : > { %v1754_v40 = vpop.eup %1753  ;;  %v1121_v46 = vsel %vm657_vm3, %v1102_v41, %v1120_v39 }
 0x473   : > { %1757 = vrcp.f32 %v1026_v37  ;;  %v1756_v43 = vpop.eup %1755  ;;  %v1104_v48 = vmul.f32 %v1754_v40, %v1076_v44  ;;  %v1122_v51 = vsel %vm659_vm4, %v1103_v47, %v1121_v46  ;;  %v1090_v52 = vadd.f32 %v1089_v45, %v1088_v17 }
 0x474   : > { %v1105_v49 = vmul.f32 %v1756_v43, %v1083_v35 }
 0x475   : > { %v1123_v55 = vsel %vm661_vm5, %v1104_v48, %v1122_v51 }
 0x476   : > { %v1124_v56 = vsel %vm663_vm6, %v1105_v49, %v1123_v55 }
 0x479   : > { %v1758_v53 = vpop.eup %1757 }
 0x47a   : > { %v1106_v54 = vmul.f32 %v1758_v53, %v1090_v52 }
 0x47c   : > { %v1125_v50 = vsel %vm665_vm7, %v1106_v54, %v1124_v56 }
 0x47d   : > { %1586 = vmatmul.msk.f32.vlgmr.msra.gmra.mxu0 %vm173_vm0, %v1125_v50 }
 0x4fa   : > { %v1145_v63 = vpop.f32.mrf.mxu0 }
 0x4fb   : > { %v1148_v0 = vadd.f32 %v1145_v63, %v2127_v5  ;;  %v1659_v5 = vld [vmem:[%s2345_s2 + $0xd] ss:$0 sm:$0xff] }
 0x4fd   : > { %v1151_v1 = vadd.f32 %v1656_v61, %v1148_v0 }
 0x4ff   : > { %1587 = vmatmul.msk.f32.vlgmr.msra.gmra.mxu2 %vm173_vm0, %v1151_v1  ;;  %1588 = vmatmul.msk.f32.vlgmr.msrb.gmra.mxu0 %vm173_vm0, %v1151_v1  ;;  %v1299_v1 = vlaneseq }
 0x57c   : > { %v1204_v3 = vpop.f32.mrf.mxu0 }
 0x57d   : > { %v1205_v8 = vadd.f32 %v1657_v62, %v1204_v3 }
 0x582   : > { %v1178_v4 = vpop.f32.mrf.mxu2 }
 0x583   : > { %v1179_v6 = vadd.f32 %v1658_v2, %v1178_v4  ;;  %v1352_v2 = vshrl.u32 %v1299_v1, 7 }
 0x585   : > { %v1215_v9 = vperm.slane %v1179_v6, 0  ;;  %v1211_v10 = vrot.slane %v1179_v6, 4  ;;  %v1209_v12 = vrot.slane %v1179_v6, 2  ;;  %v1208_v13 = vrot.slane %v1179_v6, 1  ;;  %1643 = vset.pattern.permute.xlu1 %v1352_v2  ;;  %1642 = vset.pattern.permute.xlu0 %v1352_v2 }
 0x586   : > { %v1212_v14 = vrot.slane %v1179_v6, 5  ;;  %v1210_v18 = vrot.slane %v1179_v6, 3  ;;  %v1213_v19 = vrot.slane %v1179_v6, 6  ;;  %v1214_v15 = vrot.slane %v1179_v6, 7 }
 0x587   : > { %v1231_v20 = vadd.f32 %v1215_v9, %v1205_v8  ;;  %v1219_v7 = vperm.slane %v1211_v10, 0  ;;  %v1217_v11 = vperm.slane %v1209_v12, 0  ;;  %v1216_v21 = vperm.slane %v1208_v13, 0 }
 0x588   : > { %v1220_v22 = vperm.slane %v1212_v14, 0  ;;  %v1218_v57 = vperm.slane %v1210_v18, 0  ;;  %v1221_v29 = vperm.slane %v1213_v19, 0  ;;  %v1222_v34 = vperm.slane %v1214_v15, 0 }
 0x589   : > { %v1241_v27 = vadd.f32 %v1659_v5, %v1231_v20  ;;  %v1235_v23 = vadd.f32 %v1219_v7, %v1205_v8  ;;  %v1233_v24 = vadd.f32 %v1217_v11, %v1205_v8  ;;  %v1232_v25 = vadd.f32 %v1216_v21, %v1205_v8 }
 0x58a   : > { %v1236_v26 = vadd.f32 %v1220_v22, %v1205_v8  ;;  %v1234_v28 = vadd.f32 %v1218_v57, %v1205_v8  ;;  %v1237_v36 = vadd.f32 %v1221_v29, %v1205_v8  ;;  %v1238_v39 = vadd.f32 %v1222_v34, %v1205_v8 }
 0x58b   : > { %1759 = vtanh.f32 %v1241_v27  ;;  %v1245_v30 = vadd.f32 %v1659_v5, %v1235_v23  ;;  %v1243_v31 = vadd.f32 %v1659_v5, %v1233_v24  ;;  %v1242_v32 = vadd.f32 %v1659_v5, %v1232_v25 }
 0x58c   : > { %v1246_v33 = vadd.f32 %v1659_v5, %v1236_v26  ;;  %v1244_v17 = vadd.f32 %v1659_v5, %v1234_v28  ;;  %v1247_v41 = vadd.f32 %v1659_v5, %v1237_v36  ;;  %v1248_v47 = vadd.f32 %v1659_v5, %v1238_v39 }
 0x58d   : > { %1761 = vtanh.f32 %v1245_v30  ;;  %v2279_v6 = vand.u32 127, %v1299_v1  ;;  %v1839_v34 = vmov 0  }
 0x58e   : > { %1763 = vtanh.f32 %v1243_v31 }
 0x58f   : > { %1765 = vtanh.f32 %v1242_v32 }
 0x590   : > { %1767 = vtanh.f32 %v1246_v33 }
 0x591   : > { %v1760_v37 = vpop.eup %1759  ;;  %1769 = vtanh.f32 %v1244_v17 }
 0x592   : > { %v1259_v38 = vmul.f32 %v1760_v37, %v1660_v16  ;;  %1771 = vtanh.f32 %v1247_v41 }
 0x593   : > { %v1762_v40 = vpop.eup %1761  ;;  %1773 = vtanh.f32 %v1248_v47 }
 0x594   : > { %v1764_v42 = vpop.eup %1763  ;;  %v1267_v43 = vsel %vm173_vm0, %v1259_v38, 0.0  ;;  %v1263_v44 = vmul.f32 %v1762_v40, %v1660_v16 }
 0x595   : > { %v1766_v45 = vpop.eup %1765  ;;  %1268 = vadd.xlane.f32.xlu0 %v1267_v43  ;;  %v1261_v46 = vmul.f32 %v1764_v42, %v1660_v16 }
 0x596   : > { %v1279_v35 = vsel %vm173_vm0, %v1263_v44, 0.0  ;;  %v1768_v48 = vpop.eup %1767  ;;  %v1260_v52 = vmul.f32 %v1766_v45, %v1660_v16 }
 0x597   : > { %1280 = vadd.xlane.f32.xlu2 %v1279_v35  ;;  %v1273_v49 = vsel %vm173_vm0, %v1261_v46, 0.0  ;;  %v1770_v51 = vpop.eup %1769  ;;  %v1264_v53 = vmul.f32 %v1768_v48, %v1660_v16 }
 0x598   : > { %1274 = vadd.xlane.f32.xlu1 %v1273_v49  ;;  %v1262_v54 = vmul.f32 %v1770_v51, %v1660_v16  ;;  %v1270_v55 = vsel %vm173_vm0, %v1260_v52, 0.0  ;;  %v1772_v56 = vpop.eup %1771 }
 0x599   : > { %v1282_v50 = vsel %vm173_vm0, %v1264_v53, 0.0  ;;  %v1774_v59 = vpop.eup %1773  ;;  %v1265_v60 = vmul.f32 %v1772_v56, %v1660_v16 }
 0x59a   : > { %v1276_v58 = vsel %vm173_vm0, %v1262_v54, 0.0  ;;  %v1266_v61 = vmul.f32 %v1774_v59, %v1660_v16 }
 0x59b   : > { %v1285_v63 = vsel %vm173_vm0, %v1265_v60, 0.0 }
 0x59c   : > { %v1288_v0 = vsel %vm173_vm0, %v1266_v61, 0.0 }
 0x59d   : > { %1271 = vadd.xlane.f32.xlu0 %v1270_v55 }
 0x59f   : > { %1283 = vadd.xlane.f32.xlu2 %v1282_v50 }
 0x5a0   : > { %1277 = vadd.xlane.f32.xlu1 %v1276_v58 }
 0x5a5   : > { %1286 = vadd.xlane.f32.xlu0 %v1285_v63 }
 0x5a8   : > { %1289 = vadd.xlane.f32.xlu1 %v1288_v0 }
 0x608   : > { %v1269_v62 = vpop.xlane.xlu0 %1268 }
 0x609   : > { %v1301_v9 = vperm.slane %v1269_v62, %v2279_v6 }
 0x60a   : > { %v1281_v3 = vpop.xlane.xlu2 %1280 }
 0x60b   : > { %v1275_v4 = vpop.xlane.xlu1 %1274  ;;  %v1305_v19 = vperm.slane %v1281_v3, %v2279_v6 }
 0x60c   : > { %v1303_v10 = vperm.slane %v1275_v4, %v2279_v6 }
 0x610   : > { %v1272_v8 = vpop.xlane.xlu0 %1271 }
 0x611   : > { %v1302_v5 = vperm.slane %v1272_v8, %v2279_v6 }
 0x612   : > { %v1284_v20 = vpop.xlane.xlu2 %1283 }
 0x613   : > { %v1309_v12 = vsel %vm653_vm1, %v1302_v5, %v1301_v9  ;;  %v1278_v13 = vpop.xlane.xlu1 %1277  ;;  %v1306_v21 = vperm.slane %v1284_v20, %v2279_v6 }
 0x614   : > { %v1304_v14 = vperm.slane %v1278_v13, %v2279_v6  ;;  %v1310_v18 = vsel %vm655_vm2, %v1303_v10, %v1309_v12 }
 0x616   : > { %v1311_v7 = vsel %vm657_vm3, %v1304_v14, %v1310_v18 }
 0x617   : > { %v1312_v11 = vsel %vm659_vm4, %v1305_v19, %v1311_v7 }
 0x618   : > { %v1287_v22 = vpop.xlane.xlu0 %1286  ;;  %v1313_v27 = vsel %vm661_vm5, %v1306_v21, %v1312_v11 }
 0x619   : > { %v1307_v57 = vperm.slane %v1287_v22, %v2279_v6 }
 0x61b   : > { %v1290_v23 = vpop.xlane.xlu1 %1289  ;;  %v1314_v24 = vsel %vm663_vm6, %v1307_v57, %v1313_v27 }
 0x61c   : > { %v1308_v25 = vperm.slane %v1290_v23, %v2279_v6 }
 0x61e   : > { %v1315_v26 = vsel %vm665_vm7, %v1308_v25, %v1314_v24 }
 0x61f   : > { %1317 = vxpose.xlu2.b32.start.end [1/1] (short) (narrow) %v1315_v26, 8 }
 0x681   : > { %1644 = vset.pattern.permute.xlu2 %v1352_v2 }
 0x6b8   : > { %v1333_v28 = vpop.trf.xlu2 }
 0x6b9   : > { %v1378_v29 = vperm.slane %v1333_v28, 4  ;;  %v1357_v15 = vperm.slane %v1333_v28, 1  ;;  %v1350_v30 = vperm.slane %v1333_v28, 0  ;;  %v1364_v31 = vperm.slane %v1333_v28, 2 }
 0x6ba   : > { %v1385_v32 = vperm.slane %v1333_v28, 5  ;;  %v1371_v33 = vperm.slane %v1333_v28, 3  ;;  %v1399_v16 = vperm.slane %v1333_v28, 7  ;;  %v1392_v17 = vperm.slane %v1333_v28, 6 }
 0x6bb   : > { %1383 = vperm.xlu2 %1644, %v1378_v29   ;;  %1362 = vperm.xlu1 %1643, %v1357_v15  }
 0x6bc   : > { %1355 = vperm.xlu0 %1642, %v1350_v30  }
 0x6c3   : > { %1369 = vperm.xlu1 %1643, %v1364_v31  }
 0x6c4   : > { %1390 = vperm.xlu0 %1642, %v1385_v32  }
 0x6cb   : > { %1376 = vperm.xlu1 %1643, %v1371_v33  }
 0x6cc   : > { %1404 = vperm.xlu0 %1642, %v1399_v16  }
 0x6d3   : > { %1397 = vperm.xlu1 %1643, %v1392_v17  }
 0x6d4   : > { %1646 = vset.pattern.permute.xlu0 %v1839_v34 }
 0x6db   : > { %1645 = vset.pattern.permute.xlu1 %v1839_v34 }
 0x715   : > { %v1384_v41 = vpop.permute.xlu2 %1383 }
 0x716   : > { %v1418_v43 = vadd.f32 %v1384_v41, %v1281_v3 }
 0x718   : > { %v1426_v46 = vmul.f32 0.5, %v1418_v43 }
 0x72d   : > { %v1363_v36 = vpop.permute.xlu1 %1362 }
 0x72e   : > { %v1415_v37 = vadd.f32 %v1363_v36, %v1272_v8  ;;  %v1356_v38 = vpop.permute.xlu0 %1355 }
 0x72f   : > { %v1414_v39 = vadd.f32 %v1356_v38, %v1269_v62 }
 0x730   : > { %v1423_v40 = vmul.f32 0.5, %v1415_v37 }
 0x731   : > { %v1422_v42 = vmul.f32 0.5, %v1414_v39 }
 0x732   : > { %1442 = vperm.xlu0 %1646, %v1423_v40  }
 0x733   : > { %1439 = vperm.xlu1 %1645, %v1422_v42  }
 0x735   : > { %v1370_v44 = vpop.permute.xlu1 %1369 }
 0x736   : > { %v1416_v45 = vadd.f32 %v1370_v44, %v1275_v4  ;;  %v1391_v49 = vpop.permute.xlu0 %1390 }
 0x737   : > { %v1419_v52 = vadd.f32 %v1391_v49, %v1284_v20 }
 0x738   : > { %v1424_v35 = vmul.f32 0.5, %v1416_v45 }
 0x739   : > { %v1427_v56 = vmul.f32 0.5, %v1419_v52 }
 0x73a   : > { %1451 = vperm.xlu0 %1646, %v1426_v46  }
 0x73b   : > { %1445 = vperm.xlu1 %1645, %v1424_v35  }
 0x73d   : > { %v1377_v47 = vpop.permute.xlu1 %1376 }
 0x73e   : > { %v1417_v48 = vadd.f32 %v1377_v47, %v1278_v13  ;;  %v1405_v50 = vpop.permute.xlu0 %1404 }
 0x73f   : > { %v1421_v58 = vadd.f32 %v1405_v50, %v1290_v23 }
 0x740   : > { %v1425_v51 = vmul.f32 0.5, %v1417_v48 }
 0x741   : > { %v1429_v59 = vmul.f32 0.5, %v1421_v58 }
 0x743   : > { %1448 = vperm.xlu1 %1645, %v1425_v51  }
 0x745   : > { %v1398_v53 = vpop.permute.xlu1 %1397 }
 0x746   : > { %v1420_v54 = vadd.f32 %v1398_v53, %v1287_v22 }
 0x748   : > { %v1428_v55 = vmul.f32 0.5, %v1420_v54 }
 0x74a   : > { %1457 = vperm.xlu0 %1646, %v1428_v55  }
 0x74b   : > { %1454 = vperm.xlu1 %1645, %v1427_v56  }
 0x753   : > { %1460 = vperm.xlu1 %1645, %v1429_v59  }
 0x7a4   : > { %v1443_v63 = vpop.permute.xlu0 %1442 }
 0x7a5   : > { %v1440_v60 = vpop.permute.xlu1 %1439  ;;  %v1463_v62 = vperm.slane %v1443_v63, %v2279_v6 }
 0x7a6   : > { %v1462_v2 = vperm.slane %v1440_v60, %v2279_v6 }
 0x7a8   : > { %v1470_v9 = vsel %vm653_vm1, %v1463_v62, %v1462_v2 }
 0x7ac   : > { %v1452_v1 = vpop.permute.xlu0 %1451 }
 0x7ad   : > { %v1446_v61 = vpop.permute.xlu1 %1445  ;;  %v1466_v14 = vperm.slane %v1452_v1, %v2279_v6 }
 0x7ae   : > { %v1464_v3 = vperm.slane %v1446_v61, %v2279_v6 }
 0x7b0   : > { %v1471_v5 = vsel %vm655_vm2, %v1464_v3, %v1470_v9 }
 0x7b5   : > { %v1449_v0 = vpop.permute.xlu1 %1448 }
 0x7b6   : > { %v1465_v4 = vperm.slane %v1449_v0, %v2279_v6 }
 0x7b8   : > { %v1472_v10 = vsel %vm657_vm3, %v1465_v4, %v1471_v5 }
 0x7b9   : > { %v1473_v18 = vsel %vm659_vm4, %v1466_v14, %v1472_v10 }
 0x7bc   : > { %v1458_v13 = vpop.permute.xlu0 %1457 }
 0x7bd   : > { %v1455_v8 = vpop.permute.xlu1 %1454  ;;  %v1468_v19 = vperm.slane %v1458_v13, %v2279_v6 }
 0x7be   : > { %v1467_v12 = vperm.slane %v1455_v8, %v2279_v6 }
 0x7c0   : > { %v1474_v20 = vsel %vm661_vm5, %v1467_v12, %v1473_v18 }
 0x7c1   : > { %v1475_v21 = vsel %vm663_vm6, %v1468_v19, %v1474_v20 }
 0x7c5   : > { %v1461_v7 = vpop.permute.xlu1 %1460 }
 0x7c6   : > { %v1469_v11 = vperm.slane %v1461_v7, %v2279_v6 }
 0x7c8   : > { %v1476_v22 = vsel %vm665_vm7, %v1469_v11, %v1475_v21 }
 0x7c9   : > { %1479 = vst.msk [vmem:[%s161_s16] sm:$0xff] %vm1478_vm8, %v1476_v22 }
 0x7ca   : > { %1802 = shalt.err (!%p1799_p3)
}
 0x7cb   : > { %1601 = dma.vmem_to_hbm [thread:$0]  (%p1898_p5), %s1494_s4, 128, %s1496_s5, %s1481_s6  }
 0x7cc PF: > { %p1607_p4 = scmp.ge.s32.totalorder %s1837_s15, 2  ;;  %s1507_s20 = sand.u32 1, %s1825_s12  }
 0x7cd   : > { %s1508_s24 = scalar_lea.sflag [#allocation3], %s1507_s20 }
 0x7ce   : > { %p1604_p7 = pnand %p1607_p4, %p1902_p6 }
 0x7d0   : > { %p1605_p8 = pneg %p1604_p7 }
 0x7d2   : > { %1820 = dma.done.wait (%p1605_p8), %s1508_s24, 128  }
 0x7d3   : > { %1822 = vsyncadd (%p1605_p8), %s1508_s24, 4294967168  ;;  %p13_p9 = scmp.ge.s32.totalorder %s1885_s18, 4   ;;  %s2349_s12 = smov %s1829_s13 }
 0x7d4   : > { %s2350_s13 = smov %s1833_s14  ;;  %s2351_s14 = smov %s1896_s21 }
 0x7d5   : > { %s2352_s15 = smov %s1885_s18  ;;  %15 = sbr.rel (!%p13_p9) target bundleno = 3 (0x3), region = 67 }
 0x7da   :  { %1514 = vsyncpa [#allocation3], 1 }
 0x7db   :  { %1516 = vsyncpa [#allocation3 + $0x1], 1 }

</bundles_post_ra>
